<compile_context>
chip_gen: v7x
topology: tpu7x:2x2x1
jax: 0.10.0
libtpu: 0.0.40
codegen_flags: <defaults>
</compile_context>

<pallas_src>
import jax
import jax.numpy as jnp
from jax.experimental import pallas as pl
from jax.experimental.pallas import tpu as pltpu

HIDDEN = 512
# Batch-tile cap: 512 fits VMEM comfortably on v5e/v6e/v7x and amortizes the ~0.35 us
# per-grid-step overhead 4x better than 128 (the kernel is DMA/overhead bound).
TM_MAX = 512


def _round_up(x, m):
    return ((x + m - 1) // m) * m


def _choose_tm(B):
    """Batch-tile size.

    - B < 32: one full-batch tile (block == full array dim along batch, always legal).
    - B >= 32: multiple of 16 (bf16 sublane packing), capped at TM_MAX, and small enough
      that the grid has >= 2 steps so both v7x TensorCores get batch tiles.
    """
    if B < 32:
        return B
    return min(TM_MAX, _round_up(pl.cdiv(B, 2), 16))


def ae_fused_kernel(x_ref, w1_ref, b1_ref, w2_ref, b2_ref,
                    w3_ref, b3_ref, w4_ref, b4_ref, out_ref):
    """Fused AE forward on one (TM, D) batch tile.

    Weights bf16 (VMEM-resident across grid steps), biases f32, accumulation f32.
    """
    x = x_ref[...].astype(jnp.bfloat16)                         # no-op when input is bf16

    # ---- Encoder ----
    h1 = jnp.dot(x, w1_ref[...], preferred_element_type=jnp.float32) + b1_ref[...]
    h1 = jnp.maximum(h1, 0.0)                                   # ReLU (VPU)
    z = jnp.dot(h1.astype(jnp.bfloat16), w2_ref[...],
                preferred_element_type=jnp.float32) + b2_ref[...]

    # ---- Decoder ----
    h2 = jnp.dot(z.astype(jnp.bfloat16), w3_ref[...],
                 preferred_element_type=jnp.float32) + b3_ref[...]
    h2 = jnp.maximum(h2, 0.0)                                   # ReLU (VPU)
    r = jnp.dot(h2.astype(jnp.bfloat16), w4_ref[...],
                preferred_element_type=jnp.float32) + b4_ref[...]

    # Sigmoid: exp on EUP, approx reciprocal off the VALU path; clamp so the approximation
    # can never leave the valid [0, 1] probability range.
    r = pl.reciprocal(1.0 + jnp.exp(-r), approx=True)
    r = jnp.clip(r, 0.0, 1.0)

    out_ref[...] = r.astype(out_ref.dtype)


def ae_forward(x_nchw, params, *, tm=None, out_dtype=jnp.bfloat16):
    """x_nchw: (B, C, H, W).  Returns reconstruction (B, C, H, W) in `out_dtype`.

    Default out_dtype is bf16 (halves output writeback); upcast outside if f32 is needed.
    """
    B, C, H, W = x_nchw.shape
    D = C * H * W
    # Hand the kernel bf16 input (it truncates to bf16 before the first dot anyway, so this
    # loses no additional precision and halves the input-side HBM read).  Best when this
    # wrapper is jitted with x's producer so the convert fuses; callers that already hold
    # bf16 activations can pass them directly (the astype is then a no-op).
    x_flat = x_nchw.reshape(B, D).astype(jnp.bfloat16)

    if tm is None:
        tm = _choose_tm(B)
    grid = (pl.cdiv(B, tm),)       # ragged final tile masked by Pallas -> no jnp.pad copy

    w1, b1, w2, b2, w3, b3, w4, b4 = params
    # bf16 weights: halves the (one-time) weight DMA and uses the bf16 MXU path.
    w1, w2, w3, w4 = (w.astype(jnp.bfloat16) for w in (w1, w2, w3, w4))

    def resident(shape):
        # Full-array block + constant index -> stays VMEM-resident across grid steps.
        return pl.BlockSpec(shape, lambda i: (0,) * len(shape))

    in_specs = [
        pl.BlockSpec((tm, D), lambda i: (i, 0)),                # x: tiled over batch
        resident(w1.shape), resident(b1.shape),
        resident(w2.shape), resident(b2.shape),
        resident(w3.shape), resident(b3.shape),
        resident(w4.shape), resident(b4.shape),
    ]
    out_spec = pl.BlockSpec((tm, D), lambda i: (i, 0))

    out_flat = pl.pallas_call(
        ae_fused_kernel,
        out_shape=jax.ShapeDtypeStruct((B, D), out_dtype),
        grid=grid,
        in_specs=in_specs,
        out_specs=out_spec,
        compiler_params=pltpu.CompilerParams(
            dimension_semantics=("parallel",),     # shard batch tiles across v7x's 2 TCs
            vmem_limit_bytes=32 << 20,             # ~16-18 MiB actually used at TM=512
        ),
    )(x_flat, w1, b1, w2, b2, w3, b3, w4, b4)

    return out_flat.reshape(B, C, H, W)


def init_params(key, input_dim, latent_dim, hidden_dim=HIDDEN):
    """Deterministic synthetic init (PyTorch-Linear-like uniform fan-in scaling).

    Weights are stored (fan_in, fan_out) and used as x @ W; real nn.Linear weights
    (out_features, in_features) must be transposed before use.
    """
    C, H, W = input_dim
    D = C * H * W
    dims = [(D, hidden_dim), (hidden_dim, latent_dim),
            (latent_dim, hidden_dim), (hidden_dim, D)]
    params = []
    for fan_in, fan_out in dims:
        kw, kb, key = jax.random.split(key, 3)
        bound = 1.0 / (fan_in ** 0.5)
        w = jax.random.uniform(kw, (fan_in, fan_out), jnp.float32, -bound, bound)
        b = jax.random.uniform(kb, (1, fan_out), jnp.float32, -bound, bound)
        params += [w, b]
    return params


def ae_reference(x_nchw, params):
    """Pure-JAX f32 reference of the same forward pass (loose correctness check)."""
    B, C, H, W = x_nchw.shape
    D = C * H * W
    x = x_nchw.reshape(B, D).astype(jnp.float32)
    w1, b1, w2, b2, w3, b3, w4, b4 = params
    h1 = jnp.maximum(x @ w1 + b1, 0.0)
    z = h1 @ w2 + b2
    h2 = jnp.maximum(z @ w3 + b3, 0.0)
    r = jax.nn.sigmoid(h2 @ w4 + b4)
    return r.reshape(B, C, H, W)


if __name__ == "__main__":
    key = jax.random.PRNGKey(0)
    k_x, k_p = jax.random.split(key)

    # Small shapes consistent with the module: input_dim=(4,16,16) -> D=1024, latent_dim=128.
    B, C, H, W = 2, 4, 16, 16
    latent_dim = 128
    x = jax.random.uniform(k_x, (B, C, H, W), jnp.float32)      # image-like inputs in [0,1)

    params = init_params(k_p, (C, H, W), latent_dim)

    fwd = jax.jit(ae_forward)
    r = jax.block_until_ready(fwd(x, params))

    assert r.shape == (B, C, H, W), r.shape
    assert r.dtype == jnp.bfloat16
    r32 = r.astype(jnp.float32)
    assert bool(jnp.all(jnp.isfinite(r32)))
    # Sigmoid output range is exact thanks to the in-kernel clamp.
    assert bool(jnp.all((r32 >= 0.0) & (r32 <= 1.0)))
    # Loose agreement with a full-precision reference (bf16 weights/input/output => small deltas).
    r_ref = ae_reference(x, params)
    assert bool(jnp.max(jnp.abs(r32 - r_ref)) < 5e-2)

    print("KERNEL_OK")
</pallas_src>

<mosaic_0001>
module attributes {stable_mosaic.version = 11 : i64} {
  func.func @ae_fused_kernel(%arg0: i32, %arg1: memref<2x1024xbf16, #tpu.memory_space<vmem>>, %arg2: memref<1024x512xbf16, #tpu.memory_space<vmem>>, %arg3: memref<1x512xf32, #tpu.memory_space<vmem>>, %arg4: memref<512x128xbf16, #tpu.memory_space<vmem>>, %arg5: memref<1x128xf32, #tpu.memory_space<vmem>>, %arg6: memref<128x512xbf16, #tpu.memory_space<vmem>>, %arg7: memref<1x512xf32, #tpu.memory_space<vmem>>, %arg8: memref<512x1024xbf16, #tpu.memory_space<vmem>>, %arg9: memref<1x1024xf32, #tpu.memory_space<vmem>>, %arg10: memref<2x1024xbf16, #tpu.memory_space<vmem>>) attributes {dimension_semantics = [#tpu.dimension_semantics<parallel>], iteration_bounds = array<i64: 1>, scalar_prefetch = 0 : i64, scratch_operands = 0 : i64, tpu.core_type = #tpu.core_type<tc>, window_params = [{transform_indices = @transform_0, window_bounds = array<i64: 2, 1024>}, {pipeline_mode = #tpu.pipeline_mode<synchronous>, transform_indices = @transform_1, window_bounds = array<i64: 1024, 512>}, {pipeline_mode = #tpu.pipeline_mode<synchronous>, transform_indices = @transform_2, window_bounds = array<i64: 1, 512>}, {pipeline_mode = #tpu.pipeline_mode<synchronous>, transform_indices = @transform_3, window_bounds = array<i64: 512, 128>}, {pipeline_mode = #tpu.pipeline_mode<synchronous>, transform_indices = @transform_4, window_bounds = array<i64: 1, 128>}, {pipeline_mode = #tpu.pipeline_mode<synchronous>, transform_indices = @transform_5, window_bounds = array<i64: 128, 512>}, {pipeline_mode = #tpu.pipeline_mode<synchronous>, transform_indices = @transform_6, window_bounds = array<i64: 1, 512>}, {pipeline_mode = #tpu.pipeline_mode<synchronous>, transform_indices = @transform_7, window_bounds = array<i64: 512, 1024>}, {pipeline_mode = #tpu.pipeline_mode<synchronous>, transform_indices = @transform_8, window_bounds = array<i64: 1, 1024>}, {transform_indices = @transform_9, window_bounds = array<i64: 2, 1024>}]} {
    %c0 = arith.constant 0 : index
    %c0_0 = arith.constant 0 : index
    %0 = vector.load %arg1[%c0, %c0_0] : memref<2x1024xbf16, #tpu.memory_space<vmem>>, vector<2x1024xbf16>
    %c0_1 = arith.constant 0 : index
    %c0_2 = arith.constant 0 : index
    %1 = vector.load %arg2[%c0_1, %c0_2] : memref<1024x512xbf16, #tpu.memory_space<vmem>>, vector<1024x512xbf16>
    %cst = arith.constant dense<0.000000e+00> : vector<2x512xf32>
    %2 = tpu.matmul %0, %1, %cst {dimension_numbers = #tpu.dot_dimension_numbers<[1], [0], [0], [1], [0, 0, 1, 1], [], []>} : vector<2x1024xbf16>, vector<1024x512xbf16>, vector<2x512xf32> -> vector<2x512xf32>
    %c0_3 = arith.constant 0 : index
    %c0_4 = arith.constant 0 : index
    %3 = vector.load %arg3[%c0_3, %c0_4] : memref<1x512xf32, #tpu.memory_space<vmem>>, vector<1x512xf32>
    %4 = vector.broadcast %3 : vector<1x512xf32> to vector<2x512xf32>
    %5 = arith.addf %2, %4 : vector<2x512xf32>
    %cst_5 = arith.constant 0.000000e+00 : f32
    %6 = vector.broadcast %cst_5 : f32 to vector<2x512xf32>
    %7 = arith.maximumf %5, %6 : vector<2x512xf32>
    %8 = arith.truncf %7 : vector<2x512xf32> to vector<2x512xbf16>
    %c0_6 = arith.constant 0 : index
    %c0_7 = arith.constant 0 : index
    %9 = vector.load %arg4[%c0_6, %c0_7] : memref<512x128xbf16, #tpu.memory_space<vmem>>, vector<512x128xbf16>
    %cst_8 = arith.constant dense<0.000000e+00> : vector<2x128xf32>
    %10 = tpu.matmul %8, %9, %cst_8 {dimension_numbers = #tpu.dot_dimension_numbers<[1], [0], [0], [1], [0, 0, 1, 1], [], []>} : vector<2x512xbf16>, vector<512x128xbf16>, vector<2x128xf32> -> vector<2x128xf32>
    %c0_9 = arith.constant 0 : index
    %c0_10 = arith.constant 0 : index
    %11 = vector.load %arg5[%c0_9, %c0_10] : memref<1x128xf32, #tpu.memory_space<vmem>>, vector<1x128xf32>
    %12 = vector.broadcast %11 : vector<1x128xf32> to vector<2x128xf32>
    %13 = arith.addf %10, %12 : vector<2x128xf32>
    %14 = arith.truncf %13 : vector<2x128xf32> to vector<2x128xbf16>
    %c0_11 = arith.constant 0 : index
    %c0_12 = arith.constant 0 : index
    %15 = vector.load %arg6[%c0_11, %c0_12] : memref<128x512xbf16, #tpu.memory_space<vmem>>, vector<128x512xbf16>
    %cst_13 = arith.constant dense<0.000000e+00> : vector<2x512xf32>
    %16 = tpu.matmul %14, %15, %cst_13 {dimension_numbers = #tpu.dot_dimension_numbers<[1], [0], [0], [1], [0, 0, 1, 1], [], []>} : vector<2x128xbf16>, vector<128x512xbf16>, vector<2x512xf32> -> vector<2x512xf32>
    %c0_14 = arith.constant 0 : index
    %c0_15 = arith.constant 0 : index
    %17 = vector.load %arg7[%c0_14, %c0_15] : memref<1x512xf32, #tpu.memory_space<vmem>>, vector<1x512xf32>
    %18 = vector.broadcast %17 : vector<1x512xf32> to vector<2x512xf32>
    %19 = arith.addf %16, %18 : vector<2x512xf32>
    %cst_16 = arith.constant 0.000000e+00 : f32
    %20 = vector.broadcast %cst_16 : f32 to vector<2x512xf32>
    %21 = arith.maximumf %19, %20 : vector<2x512xf32>
    %22 = arith.truncf %21 : vector<2x512xf32> to vector<2x512xbf16>
    %c0_17 = arith.constant 0 : index
    %c0_18 = arith.constant 0 : index
    %23 = vector.load %arg8[%c0_17, %c0_18] : memref<512x1024xbf16, #tpu.memory_space<vmem>>, vector<512x1024xbf16>
    %cst_19 = arith.constant dense<0.000000e+00> : vector<2x1024xf32>
    %24 = tpu.matmul %22, %23, %cst_19 {dimension_numbers = #tpu.dot_dimension_numbers<[1], [0], [0], [1], [0, 0, 1, 1], [], []>} : vector<2x512xbf16>, vector<512x1024xbf16>, vector<2x1024xf32> -> vector<2x1024xf32>
    %c0_20 = arith.constant 0 : index
    %c0_21 = arith.constant 0 : index
    %25 = vector.load %arg9[%c0_20, %c0_21] : memref<1x1024xf32, #tpu.memory_space<vmem>>, vector<1x1024xf32>
    %26 = vector.broadcast %25 : vector<1x1024xf32> to vector<2x1024xf32>
    %27 = arith.addf %24, %26 : vector<2x1024xf32>
    %cst_22 = arith.constant 0.000000e+00 : f32
    %28 = vector.broadcast %cst_22 : f32 to vector<2x1024xf32>
    %29 = arith.subf %28, %27 : vector<2x1024xf32>
    %30 = math.exp %29 : vector<2x1024xf32>
    %cst_23 = arith.constant 1.000000e+00 : f32
    %31 = vector.broadcast %cst_23 : f32 to vector<2x1024xf32>
    %32 = arith.addf %31, %30 : vector<2x1024xf32>
    %33 = tpu.reciprocal %32 {approx = true} : vector<2x1024xf32> -> vector<2x1024xf32>
    %cst_24 = arith.constant 0.000000e+00 : f32
    %cst_25 = arith.constant 1.000000e+00 : f32
    %34 = vector.broadcast %cst_24 : f32 to vector<2x1024xf32>
    %35 = arith.maximumf %34, %33 : vector<2x1024xf32>
    %36 = vector.broadcast %cst_25 : f32 to vector<2x1024xf32>
    %37 = arith.minimumf %36, %35 : vector<2x1024xf32>
    %38 = arith.truncf %37 : vector<2x1024xf32> to vector<2x1024xbf16>
    %c0_26 = arith.constant 0 : index
    %c0_27 = arith.constant 0 : index
    %39 = vector.load %arg10[%c0_26, %c0_27] : memref<2x1024xbf16, #tpu.memory_space<vmem>>, vector<2x1024xbf16>
    tpu.vector_store %arg10[%c0_26, %c0_27], %38 {strides = array<i32>} : memref<2x1024xbf16, #tpu.memory_space<vmem>>, vector<2x1024xbf16>,
    return
  }
  func.func @transform_0(%arg0: i32) -> (i32, i32) {
    %c0_i32 = arith.constant 0 : i32
    %c0_i32_0 = arith.constant 0 : i32
    return %arg0, %c0_i32 : i32, i32
  }
  func.func @transform_1(%arg0: i32) -> (i32, i32) {
    %c0_i32 = arith.constant 0 : i32
    %c0_i32_0 = arith.constant 0 : i32
    %c0_i32_1 = arith.constant 0 : i32
    return %c0_i32, %c0_i32_0 : i32, i32
  }
  func.func @transform_2(%arg0: i32) -> (i32, i32) {
    %c0_i32 = arith.constant 0 : i32
    %c0_i32_0 = arith.constant 0 : i32
    %c0_i32_1 = arith.constant 0 : i32
    return %c0_i32, %c0_i32_0 : i32, i32
  }
  func.func @transform_3(%arg0: i32) -> (i32, i32) {
    %c0_i32 = arith.constant 0 : i32
    %c0_i32_0 = arith.constant 0 : i32
    %c0_i32_1 = arith.constant 0 : i32
    return %c0_i32, %c0_i32_0 : i32, i32
  }
  func.func @transform_4(%arg0: i32) -> (i32, i32) {
    %c0_i32 = arith.constant 0 : i32
    %c0_i32_0 = arith.constant 0 : i32
    %c0_i32_1 = arith.constant 0 : i32
    return %c0_i32, %c0_i32_0 : i32, i32
  }
  func.func @transform_5(%arg0: i32) -> (i32, i32) {
    %c0_i32 = arith.constant 0 : i32
    %c0_i32_0 = arith.constant 0 : i32
    %c0_i32_1 = arith.constant 0 : i32
    return %c0_i32, %c0_i32_0 : i32, i32
  }
  func.func @transform_6(%arg0: i32) -> (i32, i32) {
    %c0_i32 = arith.constant 0 : i32
    %c0_i32_0 = arith.constant 0 : i32
    %c0_i32_1 = arith.constant 0 : i32
    return %c0_i32, %c0_i32_0 : i32, i32
  }
  func.func @transform_7(%arg0: i32) -> (i32, i32) {
    %c0_i32 = arith.constant 0 : i32
    %c0_i32_0 = arith.constant 0 : i32
    %c0_i32_1 = arith.constant 0 : i32
    return %c0_i32, %c0_i32_0 : i32, i32
  }
  func.func @transform_8(%arg0: i32) -> (i32, i32) {
    %c0_i32 = arith.constant 0 : i32
    %c0_i32_0 = arith.constant 0 : i32
    %c0_i32_1 = arith.constant 0 : i32
    return %c0_i32, %c0_i32_0 : i32, i32
  }
  func.func @transform_9(%arg0: i32) -> (i32, i32) {
    %c0_i32 = arith.constant 0 : i32
    %c0_i32_0 = arith.constant 0 : i32
    return %arg0, %c0_i32 : i32, i32
  }
}

</mosaic_0001>

<bundles_post_ra>
// kernel: ae_forward.1
= control target key start
LH: loop header
LB: loop body
LE: loop exit
PB: predicated region body
PF: predicated region fallthrough
CT: control target
= control target key end

     0   :  { %v292_v36 = vlaneseq  ;;  %v5843_v37 = vmov 1966171168   ;;  %s7763_s1 = inlined_call_operand.vmem [shape: bf16[1024,512], index: 1, kind: input, shape index: {}]   ;;  %s7764_s0 = inlined_call_operand.vmem [shape: bf16[2,1024], index: 0, kind: input, shape index: {}]   ;;  %s7765_s3 = inlined_call_operand.vmem [shape: bf16[512,128], index: 3, kind: input, shape index: {}]   ;;  %s7766_s5 = inlined_call_operand.vmem [shape: bf16[128,512], index: 5, kind: input, shape index: {}]   ;;  %s7767_s2 = inlined_call_operand.vmem [shape: f32[1,512], index: 2, kind: input, shape index: {}]   ;;  %s7768_s7 = inlined_call_operand.vmem [shape: bf16[512,1024], index: 7, kind: input, shape index: {}]   ;;  %s7769_s4 = inlined_call_operand.vmem [shape: f32[1,128], index: 4, kind: input, shape index: {}]   ;;  %s7770_s6 = inlined_call_operand.vmem [shape: f32[1,512], index: 6, kind: input, shape index: {}]   ;;  %s7771_s8 = inlined_call_operand.vmem [shape: f32[1,1024], index: 8, kind: input, shape index: {}]   ;;  %s7772_s9 = inlined_call_operand.vmem [shape: bf16[2,1024], index: 9, kind: output, shape index: {}]  }
   0x1   :  { %v5346_v0 = vld [vmem:[%s7763_s1 + $0x4] ss:$16 sps:$4 sm:$0xff]   ;;  %v5348_v1 = vld [vmem:[%s7763_s1 + $0xc] ss:$16 sps:$4 sm:$0xff]   ;;  %v5350_v2 = vld [vmem:[%s7763_s1] ss:$16 sps:$4 sm:$0xff]   ;;  %v315_v38 = vunpack.c.l.s4 %v5843_v37 }
   0x2   :  { %1650 = vmatprep.subr.bf16.mxu0 %v5346_v0  ;;  %v5351_v3 = vld [vmem:[%s7763_s1 + $0x8] ss:$16 sps:$4 sm:$0xff]   ;;  %1814 = vmatprep.subr.bf16.mxu1 %v5348_v1  ;;  %v5352_v4 = vld [vmem:[%s7763_s1 + $0x24] ss:$16 sps:$4 sm:$0xff]   ;;  %v5354_v5 = vld [vmem:[%s7763_s1 + $0x2c] ss:$16 sps:$4 sm:$0xff]  }
   0x3   :  { %1651 = vmatpush1.bf16.msra.mxu0 %v5350_v2  ;;  %1815 = vmatpush1.bf16.msra.mxu1 %v5351_v3  ;;  %v5356_v6 = vld [vmem:[%s7763_s1 + $0x20] ss:$16 sps:$4 sm:$0xff]   ;;  %v5357_v7 = vld [vmem:[%s7763_s1 + $0x28] ss:$16 sps:$4 sm:$0xff]   ;;  %v5358_v8 = vld [vmem:[%s7763_s1 + $0x44] ss:$16 sps:$4 sm:$0xff]   ;;  %v316_v43 = vunpack.c.0.s8 %v315_v38 }
   0x4   :  { %1652 = vmatprep.subr.bf16.mxu0 %v5352_v4  ;;  %1816 = vmatprep.subr.bf16.mxu1 %v5354_v5  ;;  %v5360_v9 = vld [vmem:[%s7763_s1 + $0x4c] ss:$16 sps:$4 sm:$0xff]   ;;  %v5362_v10 = vld [vmem:[%s7763_s1 + $0x40] ss:$16 sps:$4 sm:$0xff]   ;;  %v5363_v11 = vld [vmem:[%s7763_s1 + $0x48] ss:$16 sps:$4 sm:$0xff]  }
   0x5   :  { %v5364_v12 = vld [vmem:[%s7763_s1 + $0x64] ss:$16 sps:$4 sm:$0xff]   ;;  %v5366_v13 = vld [vmem:[%s7763_s1 + $0x6c] ss:$16 sps:$4 sm:$0xff]   ;;  %v5368_v14 = vld [vmem:[%s7763_s1 + $0x60] ss:$16 sps:$4 sm:$0xff]  }
   0x6   :  { %v5369_v15 = vld [vmem:[%s7763_s1 + $0x68] ss:$16 sps:$4 sm:$0xff]   ;;  %v5370_v16 = vld [vmem:[%s7763_s1 + $0x84] ss:$16 sps:$4 sm:$0xff]   ;;  %v5372_v17 = vld [vmem:[%s7763_s1 + $0x8c] ss:$16 sps:$4 sm:$0xff]  }
   0x7   :  { %1653 = vmatpush1.bf16.msra.mxu0 %v5356_v6  ;;  %1817 = vmatpush1.bf16.msra.mxu1 %v5357_v7  ;;  %v5374_v18 = vld [vmem:[%s7763_s1 + $0x80] ss:$16 sps:$4 sm:$0xff]   ;;  %v5375_v19 = vld [vmem:[%s7763_s1 + $0x88] ss:$16 sps:$4 sm:$0xff]   ;;  %v5376_v20 = vld [vmem:[%s7763_s1 + $0xa4] ss:$16 sps:$4 sm:$0xff]  }
   0x8   :  { %1654 = vmatprep.subr.bf16.mxu0 %v5358_v8  ;;  %1818 = vmatprep.subr.bf16.mxu1 %v5360_v9  ;;  %v5378_v21 = vld [vmem:[%s7763_s1 + $0xac] ss:$16 sps:$4 sm:$0xff]   ;;  %v5380_v22 = vld [vmem:[%s7763_s1 + $0xa0] ss:$16 sps:$4 sm:$0xff]   ;;  %v5381_v23 = vld [vmem:[%s7763_s1 + $0xa8] ss:$16 sps:$4 sm:$0xff]  }
   0x9   :  { %v5382_v24 = vld [vmem:[%s7763_s1 + $0xc4] ss:$16 sps:$4 sm:$0xff]   ;;  %v5384_v25 = vld [vmem:[%s7763_s1 + $0xcc] ss:$16 sps:$4 sm:$0xff]   ;;  %v5386_v26 = vld [vmem:[%s7763_s1 + $0xc0] ss:$16 sps:$4 sm:$0xff]  }
   0xa   :  { %v5387_v27 = vld [vmem:[%s7763_s1 + $0xc8] ss:$16 sps:$4 sm:$0xff]   ;;  %v5388_v28 = vld [vmem:[%s7763_s1 + $0xe4] ss:$16 sps:$4 sm:$0xff]   ;;  %v5390_v29 = vld [vmem:[%s7763_s1 + $0xec] ss:$16 sps:$4 sm:$0xff]  }
   0xb   :  { %1655 = vmatpush1.bf16.msra.mxu0 %v5362_v10  ;;  %1819 = vmatpush1.bf16.msra.mxu1 %v5363_v11  ;;  %v5392_v30 = vld [vmem:[%s7763_s1 + $0xe0] ss:$16 sps:$4 sm:$0xff]   ;;  %v5393_v31 = vld [vmem:[%s7763_s1 + $0xe8] ss:$16 sps:$4 sm:$0xff]   ;;  %v5394_v32 = vld [vmem:[%s7763_s1 + $0x104] ss:$16 sps:$4 sm:$0xff]  }
   0xc   :  { %1656 = vmatprep.subr.bf16.mxu0 %v5364_v12  ;;  %1820 = vmatprep.subr.bf16.mxu1 %v5366_v13  ;;  %v5396_v33 = vld [vmem:[%s7763_s1 + $0x10c] ss:$16 sps:$4 sm:$0xff]   ;;  %v5398_v34 = vld [vmem:[%s7763_s1 + $0x100] ss:$16 sps:$4 sm:$0xff]   ;;  %v5399_v35 = vld [vmem:[%s7763_s1 + $0x108] ss:$16 sps:$4 sm:$0xff]  }
   0xd   :  { %v5400_v39 = vld [vmem:[%s7763_s1 + $0x124] ss:$16 sps:$4 sm:$0xff]   ;;  %v5402_v40 = vld [vmem:[%s7763_s1 + $0x12c] ss:$16 sps:$4 sm:$0xff]   ;;  %v5404_v41 = vld [vmem:[%s7763_s1 + $0x120] ss:$16 sps:$4 sm:$0xff]  }
   0xe   :  { %v6012_v42 = vshrl.u32 %v292_v36, 7  ;;  %v5405_v44 = vld [vmem:[%s7763_s1 + $0x128] ss:$16 sps:$4 sm:$0xff]   ;;  %v5406_v45 = vld [vmem:[%s7763_s1 + $0x144] ss:$16 sps:$4 sm:$0xff]  }
   0xf   :  { %1657 = vmatpush1.bf16.msra.mxu0 %v5368_v14  ;;  %1821 = vmatpush1.bf16.msra.mxu1 %v5369_v15  ;;  %v5408_v46 = vld [vmem:[%s7763_s1 + $0x14c] ss:$16 sps:$4 sm:$0xff]   ;;  %v5410_v47 = vld [vmem:[%s7763_s1 + $0x140] ss:$16 sps:$4 sm:$0xff]   ;;  %v5411_v48 = vld [vmem:[%s7763_s1 + $0x148] ss:$16 sps:$4 sm:$0xff]  }
  0x10   :  { %1658 = vmatprep.subr.bf16.mxu0 %v5370_v16  ;;  %1822 = vmatprep.subr.bf16.mxu1 %v5372_v17  ;;  %v6030_v49 = vsub.s32 %v316_v43, %v6012_v42  ;;  %v5412_v50 = vld [vmem:[%s7763_s1 + $0x164] ss:$16 sps:$4 sm:$0xff]   ;;  %v5414_v51 = vld [vmem:[%s7763_s1 + $0x16c] ss:$16 sps:$4 sm:$0xff]   ;;  %v5416_v53 = vld [vmem:[%s7763_s1 + $0x160] ss:$16 sps:$4 sm:$0xff]  }
  0x11   :  { %v6041_v52 = vld [vmem:[%s7764_s0] sm:$0xff]  ;;  %v5417_v55 = vld [vmem:[%s7763_s1 + $0x168] ss:$16 sps:$4 sm:$0xff]   ;;  %v5420_v57 = vld [vmem:[%s7763_s1 + $0x18c] ss:$16 sps:$4 sm:$0xff]  }
  0x12   :  { %v320_v54 = vrot.slane %v6041_v52, %v6030_v49  ;;  %v5418_v56 = vld [vmem:[%s7763_s1 + $0x184] ss:$16 sps:$4 sm:$0xff]   ;;  %v5422_v59 = vld [vmem:[%s7763_s1 + $0x180] ss:$16 sps:$4 sm:$0xff]   ;;  %v5423_v61 = vld [vmem:[%s7763_s1 + $0x188] ss:$16 sps:$4 sm:$0xff]  }
  0x13   :  { %1659 = vmatpush1.bf16.msra.mxu0 %v5374_v18  ;;  %1823 = vmatpush1.bf16.msra.mxu1 %v5375_v19  ;;  %v5424_v62 = vld [vmem:[%s7763_s1 + $0x1a4] ss:$16 sps:$4 sm:$0xff]   ;;  %v5426_v63 = vld [vmem:[%s7763_s1 + $0x1ac] ss:$16 sps:$4 sm:$0xff]   ;;  %v5428_v0 = vld [vmem:[%s7763_s1 + $0x1a0] ss:$16 sps:$4 sm:$0xff]  }
  0x14   :  { %1660 = vmatprep.subr.bf16.mxu0 %v5376_v20  ;;  %1824 = vmatprep.subr.bf16.mxu1 %v5378_v21  ;;  %v328_v58 = vcombine.high %v320_v54, %v320_v54  ;;  %v5429_v1 = vld [vmem:[%s7763_s1 + $0x1a8] ss:$16 sps:$4 sm:$0xff]   ;;  %v5430_v2 = vld [vmem:[%s7763_s1 + $0x1c4] ss:$16 sps:$4 sm:$0xff]   ;;  %v5432_v3 = vld [vmem:[%s7763_s1 + $0x1cc] ss:$16 sps:$4 sm:$0xff]   ;;  %v6110_v13 = vrot.slane %v320_v54, %v6030_v49 }
  0x15   :  { %v5434_v4 = vld [vmem:[%s7763_s1 + $0x1c0] ss:$16 sps:$4 sm:$0xff]   ;;  %v5435_v5 = vld [vmem:[%s7763_s1 + $0x1c8] ss:$16 sps:$4 sm:$0xff]   ;;  %v5436_v6 = vld [vmem:[%s7763_s1 + $0x1e4] ss:$16 sps:$4 sm:$0xff]  }
  0x16   :  { %v350_v60 = vrot.slane %v328_v58, %v6030_v49  ;;  %v5438_v7 = vld [vmem:[%s7763_s1 + $0x1ec] ss:$16 sps:$4 sm:$0xff]   ;;  %v5440_v8 = vld [vmem:[%s7763_s1 + $0x1e0] ss:$16 sps:$4 sm:$0xff]   ;;  %v5441_v9 = vld [vmem:[%s7763_s1 + $0x1e8] ss:$16 sps:$4 sm:$0xff]  }
  0x17   :  { %1661 = vmatpush1.bf16.msra.mxu0 %v5380_v22  ;;  %1825 = vmatpush1.bf16.msra.mxu1 %v5381_v23  ;;  %v5444_v10 = vld [vmem:[%s7763_s1 + $0x204] ss:$16 sps:$4 sm:$0xff]   ;;  %v5447_v11 = vld [vmem:[%s7763_s1 + $0x20c] ss:$16 sps:$4 sm:$0xff]   ;;  %v5442_v12 = vld [vmem:[%s7763_s1 + $0x200] ss:$16 sps:$4 sm:$0xff]  }
  0x18   :  { %1662 = vmatprep.subr.bf16.mxu0 %v5382_v24  ;;  %1826 = vmatprep.subr.bf16.mxu1 %v5384_v25  ;;  %v5445_v14 = vld [vmem:[%s7763_s1 + $0x208] ss:$16 sps:$4 sm:$0xff]   ;;  %v5450_v15 = vld [vmem:[%s7763_s1 + $0x224] ss:$16 sps:$4 sm:$0xff]   ;;  %v5453_v16 = vld [vmem:[%s7763_s1 + $0x22c] ss:$16 sps:$4 sm:$0xff]   ;;  %v360_v17 = vcombine.high %v350_v60, %v350_v60 }
  0x19   :  { %1682 = vmatprep.mubr.bf16.mxu0 %v350_v60  ;;  %1846 = vmatprep.mubr.bf16.mxu1 %v350_v60  ;;  %v5448_v18 = vld [vmem:[%s7763_s1 + $0x220] ss:$16 sps:$4 sm:$0xff]   ;;  %v5451_v19 = vld [vmem:[%s7763_s1 + $0x228] ss:$16 sps:$4 sm:$0xff]   ;;  %v5456_v20 = vld [vmem:[%s7763_s1 + $0x244] ss:$16 sps:$4 sm:$0xff]  }
  0x1a   :  { %v5459_v21 = vld [vmem:[%s7763_s1 + $0x24c] ss:$16 sps:$4 sm:$0xff]   ;;  %v5454_v22 = vld [vmem:[%s7763_s1 + $0x240] ss:$16 sps:$4 sm:$0xff]   ;;  %v5457_v23 = vld [vmem:[%s7763_s1 + $0x248] ss:$16 sps:$4 sm:$0xff]  }
  0x1b   :  { %1663 = vmatpush1.bf16.msra.mxu0 %v5386_v26  ;;  %1827 = vmatpush1.bf16.msra.mxu1 %v5387_v27  ;;  %v5462_v24 = vld [vmem:[%s7763_s1 + $0x264] ss:$16 sps:$4 sm:$0xff]   ;;  %v5465_v25 = vld [vmem:[%s7763_s1 + $0x26c] ss:$16 sps:$4 sm:$0xff]   ;;  %v5460_v26 = vld [vmem:[%s7763_s1 + $0x260] ss:$16 sps:$4 sm:$0xff]  }
  0x1c   :  { %1664 = vmatprep.subr.bf16.mxu0 %v5388_v28  ;;  %1828 = vmatprep.subr.bf16.mxu1 %v5390_v29  ;;  %v5463_v27 = vld [vmem:[%s7763_s1 + $0x268] ss:$16 sps:$4 sm:$0xff]   ;;  %v5468_v28 = vld [vmem:[%s7763_s1 + $0x284] ss:$16 sps:$4 sm:$0xff]   ;;  %v5471_v29 = vld [vmem:[%s7763_s1 + $0x28c] ss:$16 sps:$4 sm:$0xff]  }
  0x1d   :  { %v5480_v36 = vld [vmem:[%s7763_s1 + $0x2c4] ss:$16 sps:$4 sm:$0xff]   ;;  %v5483_v37 = vld [vmem:[%s7763_s1 + $0x2cc] ss:$16 sps:$4 sm:$0xff]   ;;  %v5478_v38 = vld [vmem:[%s7763_s1 + $0x2c0] ss:$16 sps:$4 sm:$0xff]  }
  0x1e   :  { %v5484_v43 = vld [vmem:[%s7763_s1 + $0x2e0] ss:$16 sps:$4 sm:$0xff]   ;;  %v5499_v54 = vld [vmem:[%s7763_s1 + $0x328] ss:$16 sps:$4 sm:$0xff]   ;;  %v5513_v60 = vld [vmem:[%s7763_s1 + $0x36c] ss:$16 sps:$4 sm:$0xff]  }
  0x1f   :  { %1665 = vmatpush1.bf16.msra.mxu0 %v5392_v30  ;;  %1829 = vmatpush1.bf16.msra.mxu1 %v5393_v31  ;;  %v5466_v30 = vld [vmem:[%s7763_s1 + $0x280] ss:$16 sps:$4 sm:$0xff]   ;;  %v5469_v31 = vld [vmem:[%s7763_s1 + $0x288] ss:$16 sps:$4 sm:$0xff]  }
  0x20   :  { %1666 = vmatprep.subr.bf16.mxu0 %v5394_v32  ;;  %1830 = vmatprep.subr.bf16.mxu1 %v5396_v33  ;;  %v5474_v32 = vld [vmem:[%s7763_s1 + $0x2a4] ss:$16 sps:$4 sm:$0xff]   ;;  %v5477_v33 = vld [vmem:[%s7763_s1 + $0x2ac] ss:$16 sps:$4 sm:$0xff]   ;;  %v5505_v58 = vld [vmem:[%s7763_s1 + $0x348] ss:$16 sps:$4 sm:$0xff]  }
  0x23   :  { %1667 = vmatpush1.bf16.msra.mxu0 %v5398_v34  ;;  %1831 = vmatpush1.bf16.msra.mxu1 %v5399_v35  ;;  %v5472_v34 = vld [vmem:[%s7763_s1 + $0x2a0] ss:$16 sps:$4 sm:$0xff]   ;;  %v5475_v35 = vld [vmem:[%s7763_s1 + $0x2a8] ss:$16 sps:$4 sm:$0xff]  }
  0x24   :  { %1668 = vmatprep.subr.bf16.mxu0 %v5400_v39  ;;  %1832 = vmatprep.subr.bf16.mxu1 %v5402_v40  ;;  %v5481_v39 = vld [vmem:[%s7763_s1 + $0x2c8] ss:$16 sps:$4 sm:$0xff]   ;;  %v5486_v40 = vld [vmem:[%s7763_s1 + $0x2e4] ss:$16 sps:$4 sm:$0xff]  }
  0x27   :  { %1669 = vmatpush1.bf16.msra.mxu0 %v5404_v41  ;;  %1833 = vmatpush1.bf16.msra.mxu1 %v5405_v44  ;;  %v5489_v41 = vld [vmem:[%s7763_s1 + $0x2ec] ss:$16 sps:$4 sm:$0xff]   ;;  %v5487_v44 = vld [vmem:[%s7763_s1 + $0x2e8] ss:$16 sps:$4 sm:$0xff]  }
  0x28   :  { %1670 = vmatprep.subr.bf16.mxu0 %v5406_v45  ;;  %1834 = vmatprep.subr.bf16.mxu1 %v5408_v46  ;;  %v5492_v45 = vld [vmem:[%s7763_s1 + $0x304] ss:$16 sps:$4 sm:$0xff]   ;;  %v5495_v46 = vld [vmem:[%s7763_s1 + $0x30c] ss:$16 sps:$4 sm:$0xff]  }
  0x2b   :  { %1671 = vmatpush1.bf16.msra.mxu0 %v5410_v47  ;;  %1835 = vmatpush1.bf16.msra.mxu1 %v5411_v48  ;;  %v5490_v47 = vld [vmem:[%s7763_s1 + $0x300] ss:$16 sps:$4 sm:$0xff]   ;;  %v5493_v48 = vld [vmem:[%s7763_s1 + $0x308] ss:$16 sps:$4 sm:$0xff]  }
  0x2c   :  { %1672 = vmatprep.subr.bf16.mxu0 %v5412_v50  ;;  %1836 = vmatprep.subr.bf16.mxu1 %v5414_v51  ;;  %v5498_v50 = vld [vmem:[%s7763_s1 + $0x324] ss:$16 sps:$4 sm:$0xff]   ;;  %v5501_v51 = vld [vmem:[%s7763_s1 + $0x32c] ss:$16 sps:$4 sm:$0xff]  }
  0x2f   :  { %1673 = vmatpush1.bf16.msra.mxu0 %v5416_v53  ;;  %1837 = vmatpush1.bf16.msra.mxu1 %v5417_v55  ;;  %v5496_v53 = vld [vmem:[%s7763_s1 + $0x320] ss:$16 sps:$4 sm:$0xff]   ;;  %v5504_v55 = vld [vmem:[%s7763_s1 + $0x344] ss:$16 sps:$4 sm:$0xff]  }
  0x30   :  { %1674 = vmatprep.subr.bf16.mxu0 %v5418_v56  ;;  %1838 = vmatprep.subr.bf16.mxu1 %v5420_v57  ;;  %v5507_v56 = vld [vmem:[%s7763_s1 + $0x34c] ss:$16 sps:$4 sm:$0xff]   ;;  %v5502_v57 = vld [vmem:[%s7763_s1 + $0x340] ss:$16 sps:$4 sm:$0xff]  }
  0x33   :  { %1675 = vmatpush1.bf16.msra.mxu0 %v5422_v59  ;;  %1839 = vmatpush1.bf16.msra.mxu1 %v5423_v61  ;;  %v5510_v59 = vld [vmem:[%s7763_s1 + $0x364] ss:$16 sps:$4 sm:$0xff]   ;;  %v5508_v61 = vld [vmem:[%s7763_s1 + $0x360] ss:$16 sps:$4 sm:$0xff]  }
  0x34   :  { %1676 = vmatprep.subr.bf16.mxu0 %v5424_v62  ;;  %1840 = vmatprep.subr.bf16.mxu1 %v5426_v63  ;;  %v5511_v62 = vld [vmem:[%s7763_s1 + $0x368] ss:$16 sps:$4 sm:$0xff]   ;;  %v5516_v63 = vld [vmem:[%s7763_s1 + $0x384] ss:$16 sps:$4 sm:$0xff]  }
  0x37   :  { %1677 = vmatpush1.bf16.msra.mxu0 %v5428_v0  ;;  %1841 = vmatpush1.bf16.msra.mxu1 %v5429_v1  ;;  %v5519_v0 = vld [vmem:[%s7763_s1 + $0x38c] ss:$16 sps:$4 sm:$0xff]   ;;  %v5514_v1 = vld [vmem:[%s7763_s1 + $0x380] ss:$16 sps:$4 sm:$0xff]  }
  0x38   :  { %1678 = vmatprep.subr.bf16.mxu0 %v5430_v2  ;;  %1842 = vmatprep.subr.bf16.mxu1 %v5432_v3  ;;  %v5517_v2 = vld [vmem:[%s7763_s1 + $0x388] ss:$16 sps:$4 sm:$0xff]   ;;  %v5522_v3 = vld [vmem:[%s7763_s1 + $0x3a4] ss:$16 sps:$4 sm:$0xff]  }
  0x3b   :  { %1679 = vmatpush1.bf16.msra.mxu0 %v5434_v4  ;;  %1843 = vmatpush1.bf16.msra.mxu1 %v5435_v5  ;;  %v5525_v4 = vld [vmem:[%s7763_s1 + $0x3ac] ss:$16 sps:$4 sm:$0xff]   ;;  %v5520_v5 = vld [vmem:[%s7763_s1 + $0x3a0] ss:$16 sps:$4 sm:$0xff]  }
  0x3c   :  { %1680 = vmatprep.subr.bf16.mxu0 %v5436_v6  ;;  %1844 = vmatprep.subr.bf16.mxu1 %v5438_v7  ;;  %v5523_v6 = vld [vmem:[%s7763_s1 + $0x3a8] ss:$16 sps:$4 sm:$0xff]   ;;  %v5528_v7 = vld [vmem:[%s7763_s1 + $0x3c4] ss:$16 sps:$4 sm:$0xff]  }
  0x3f   :  { %1681 = vmatpush1.bf16.msra.mxu0 %v5440_v8  ;;  %1845 = vmatpush1.bf16.msra.mxu1 %v5441_v9  ;;  %v5531_v8 = vld [vmem:[%s7763_s1 + $0x3cc] ss:$16 sps:$4 sm:$0xff]   ;;  %v313_v9 = vcombine.high %v6041_v52, %v6041_v52 }
  0x40   :  { %1691 = vmatprep.subr.bf16.mxu0 %v5444_v10  ;;  %1855 = vmatprep.subr.bf16.mxu1 %v5447_v11  ;;  %v5526_v10 = vld [vmem:[%s7763_s1 + $0x3c0] ss:$16 sps:$4 sm:$0xff]   ;;  %v5529_v11 = vld [vmem:[%s7763_s1 + $0x3c8] ss:$16 sps:$4 sm:$0xff]   ;;  %v5537_v52 = vld [vmem:[%s7763_s1 + $0x3ec] ss:$16 sps:$4 sm:$0xff]  }
  0x42   :  { %1683 = vmatmul.mubr.bf16.vlgmr.msra.gmra.mrb[0].mxu0 %v6110_v13  ;;  %1847 = vmatmul.mubr.bf16.vlgmr.msra.gmra.mrb[0].mxu1 %v6110_v13 }
  0x43   :  { %1692 = vmatpush1.bf16.msra.mxu0 %v5442_v12  ;;  %1856 = vmatpush1.bf16.msra.mxu1 %v5445_v14  ;;  %v5534_v12 = vld [vmem:[%s7763_s1 + $0x3e4] ss:$16 sps:$4 sm:$0xff]   ;;  %v6294_v14 = vrot.slane %v313_v9, %v6030_v49  ;;  %v5613_v9 = vld [vmem:[%s7763_s1 + $0x588] ss:$16 sps:$4 sm:$0xff]  }
  0x44   :  { %1693 = vmatprep.subr.bf16.mxu0 %v5450_v15  ;;  %1857 = vmatprep.subr.bf16.mxu1 %v5453_v16  ;;  %v5532_v15 = vld [vmem:[%s7763_s1 + $0x3e0] ss:$16 sps:$4 sm:$0xff]   ;;  %v5535_v16 = vld [vmem:[%s7763_s1 + $0x3e8] ss:$16 sps:$4 sm:$0xff]  }
  0x45   :  { %1723 = vmatprep.mubr.bf16.mxu0 %v360_v17  ;;  %1887 = vmatprep.mubr.bf16.mxu1 %v360_v17  ;;  %v5540_v17 = vld [vmem:[%s7763_s1 + $0x404] ss:$16 sps:$4 sm:$0xff]  }
  0x47   :  { %1694 = vmatpush1.bf16.msra.mxu0 %v5448_v18  ;;  %1858 = vmatpush1.bf16.msra.mxu1 %v5451_v19  ;;  %v5543_v18 = vld [vmem:[%s7763_s1 + $0x40c] ss:$16 sps:$4 sm:$0xff]   ;;  %v329_v19 = vcombine.high %v6294_v14, %v6294_v14 }
  0x48   :  { %1695 = vmatprep.subr.bf16.mxu0 %v5456_v20  ;;  %1859 = vmatprep.subr.bf16.mxu1 %v5459_v21  ;;  %v5538_v20 = vld [vmem:[%s7763_s1 + $0x400] ss:$16 sps:$4 sm:$0xff]   ;;  %v358_v21 = vcombine.high %v6110_v13, %v6110_v13 }
  0x49   :  { %v5544_v13 = vld [vmem:[%s7763_s1 + $0x420] ss:$16 sps:$4 sm:$0xff]  }
  0x4b   :  { %1696 = vmatpush1.bf16.msra.mxu0 %v5454_v22  ;;  %1860 = vmatpush1.bf16.msra.mxu1 %v5457_v23  ;;  %v5541_v22 = vld [vmem:[%s7763_s1 + $0x408] ss:$16 sps:$4 sm:$0xff]   ;;  %v5546_v23 = vld [vmem:[%s7763_s1 + $0x424] ss:$16 sps:$4 sm:$0xff]  }
  0x4c   :  { %1697 = vmatprep.subr.bf16.mxu0 %v5462_v24  ;;  %1861 = vmatprep.subr.bf16.mxu1 %v5465_v25  ;;  %v5549_v24 = vld [vmem:[%s7763_s1 + $0x42c] ss:$16 sps:$4 sm:$0xff]   ;;  %v6325_v25 = vrot.slane %v329_v19, %v6030_v49  ;;  %v5630_v19 = vld [vmem:[%s7763_s1 + $0x5e4] ss:$16 sps:$4 sm:$0xff]  }
  0x4f   :  { %1698 = vmatpush1.bf16.msra.mxu0 %v5460_v26  ;;  %1862 = vmatpush1.bf16.msra.mxu1 %v5463_v27  ;;  %v5547_v26 = vld [vmem:[%s7763_s1 + $0x428] ss:$16 sps:$4 sm:$0xff]   ;;  %v5552_v27 = vld [vmem:[%s7763_s1 + $0x444] ss:$16 sps:$4 sm:$0xff]  }
  0x50   :  { %1699 = vmatprep.subr.bf16.mxu0 %v5468_v28  ;;  %1863 = vmatprep.subr.bf16.mxu1 %v5471_v29  ;;  %v5555_v28 = vld [vmem:[%s7763_s1 + $0x44c] ss:$16 sps:$4 sm:$0xff]   ;;  %v5550_v29 = vld [vmem:[%s7763_s1 + $0x440] ss:$16 sps:$4 sm:$0xff]  }
  0x53   :  { %1700 = vmatpush1.bf16.msra.mxu0 %v5466_v30  ;;  %1864 = vmatpush1.bf16.msra.mxu1 %v5469_v31  ;;  %v5553_v30 = vld [vmem:[%s7763_s1 + $0x448] ss:$16 sps:$4 sm:$0xff]   ;;  %v5558_v31 = vld [vmem:[%s7763_s1 + $0x464] ss:$16 sps:$4 sm:$0xff]  }
  0x54   :  { %1701 = vmatprep.subr.bf16.mxu0 %v5474_v32  ;;  %1865 = vmatprep.subr.bf16.mxu1 %v5477_v33  ;;  %v5561_v32 = vld [vmem:[%s7763_s1 + $0x46c] ss:$16 sps:$4 sm:$0xff]   ;;  %v5556_v33 = vld [vmem:[%s7763_s1 + $0x460] ss:$16 sps:$4 sm:$0xff]  }
  0x57   :  { %1702 = vmatpush1.bf16.msra.mxu0 %v5472_v34  ;;  %1866 = vmatpush1.bf16.msra.mxu1 %v5475_v35  ;;  %v5559_v34 = vld [vmem:[%s7763_s1 + $0x468] ss:$16 sps:$4 sm:$0xff]   ;;  %v5564_v35 = vld [vmem:[%s7763_s1 + $0x484] ss:$16 sps:$4 sm:$0xff]  }
  0x58   :  { %1703 = vmatprep.subr.bf16.mxu0 %v5480_v36  ;;  %1867 = vmatprep.subr.bf16.mxu1 %v5483_v37  ;;  %v5567_v36 = vld [vmem:[%s7763_s1 + $0x48c] ss:$16 sps:$4 sm:$0xff]   ;;  %v5562_v37 = vld [vmem:[%s7763_s1 + $0x480] ss:$16 sps:$4 sm:$0xff]  }
  0x5b   :  { %1704 = vmatpush1.bf16.msra.mxu0 %v5478_v38  ;;  %1868 = vmatpush1.bf16.msra.mxu1 %v5481_v39  ;;  %v5565_v38 = vld [vmem:[%s7763_s1 + $0x488] ss:$16 sps:$4 sm:$0xff]   ;;  %v5570_v39 = vld [vmem:[%s7763_s1 + $0x4a4] ss:$16 sps:$4 sm:$0xff]  }
  0x5c   :  { %1705 = vmatprep.subr.bf16.mxu0 %v5486_v40  ;;  %1869 = vmatprep.subr.bf16.mxu1 %v5489_v41  ;;  %v5573_v40 = vld [vmem:[%s7763_s1 + $0x4ac] ss:$16 sps:$4 sm:$0xff]   ;;  %v5568_v41 = vld [vmem:[%s7763_s1 + $0x4a0] ss:$16 sps:$4 sm:$0xff]  }
  0x5f   :  { %1706 = vmatpush1.bf16.msra.mxu0 %v5484_v43  ;;  %1870 = vmatpush1.bf16.msra.mxu1 %v5487_v44  ;;  %v5571_v43 = vld [vmem:[%s7763_s1 + $0x4a8] ss:$16 sps:$4 sm:$0xff]   ;;  %v5576_v44 = vld [vmem:[%s7763_s1 + $0x4c4] ss:$16 sps:$4 sm:$0xff]  }
  0x60   :  { %1707 = vmatprep.subr.bf16.mxu0 %v5492_v45  ;;  %1871 = vmatprep.subr.bf16.mxu1 %v5495_v46  ;;  %v5579_v45 = vld [vmem:[%s7763_s1 + $0x4cc] ss:$16 sps:$4 sm:$0xff]   ;;  %v5574_v46 = vld [vmem:[%s7763_s1 + $0x4c0] ss:$16 sps:$4 sm:$0xff]  }
  0x63   :  { %1708 = vmatpush1.bf16.msra.mxu0 %v5490_v47  ;;  %1872 = vmatpush1.bf16.msra.mxu1 %v5493_v48  ;;  %v5577_v47 = vld [vmem:[%s7763_s1 + $0x4c8] ss:$16 sps:$4 sm:$0xff]   ;;  %v5582_v48 = vld [vmem:[%s7763_s1 + $0x4e4] ss:$16 sps:$4 sm:$0xff]  }
  0x64   :  { %1709 = vmatprep.subr.bf16.mxu0 %v5498_v50  ;;  %1873 = vmatprep.subr.bf16.mxu1 %v5501_v51  ;;  %v5585_v50 = vld [vmem:[%s7763_s1 + $0x4ec] ss:$16 sps:$4 sm:$0xff]   ;;  %v5580_v51 = vld [vmem:[%s7763_s1 + $0x4e0] ss:$16 sps:$4 sm:$0xff]  }
  0x67   :  { %1710 = vmatpush1.bf16.msra.mxu0 %v5496_v53  ;;  %1874 = vmatpush1.bf16.msra.mxu1 %v5499_v54  ;;  %v5583_v53 = vld [vmem:[%s7763_s1 + $0x4e8] ss:$16 sps:$4 sm:$0xff]   ;;  %v5588_v54 = vld [vmem:[%s7763_s1 + $0x504] ss:$16 sps:$4 sm:$0xff]  }
  0x68   :  { %1711 = vmatprep.subr.bf16.mxu0 %v5504_v55  ;;  %1875 = vmatprep.subr.bf16.mxu1 %v5507_v56  ;;  %v5591_v55 = vld [vmem:[%s7763_s1 + $0x50c] ss:$16 sps:$4 sm:$0xff]   ;;  %v5586_v56 = vld [vmem:[%s7763_s1 + $0x500] ss:$16 sps:$4 sm:$0xff]  }
  0x6b   :  { %1712 = vmatpush1.bf16.msra.mxu0 %v5502_v57  ;;  %1876 = vmatpush1.bf16.msra.mxu1 %v5505_v58  ;;  %v5589_v57 = vld [vmem:[%s7763_s1 + $0x508] ss:$16 sps:$4 sm:$0xff]   ;;  %v5594_v58 = vld [vmem:[%s7763_s1 + $0x524] ss:$16 sps:$4 sm:$0xff]  }
  0x6c   :  { %1713 = vmatprep.subr.bf16.mxu0 %v5510_v59  ;;  %1877 = vmatprep.subr.bf16.mxu1 %v5513_v60  ;;  %v5597_v59 = vld [vmem:[%s7763_s1 + $0x52c] ss:$16 sps:$4 sm:$0xff]   ;;  %v5592_v60 = vld [vmem:[%s7763_s1 + $0x520] ss:$16 sps:$4 sm:$0xff]  }
  0x6f   :  { %1714 = vmatpush1.bf16.msra.mxu0 %v5508_v61  ;;  %1878 = vmatpush1.bf16.msra.mxu1 %v5511_v62  ;;  %v5595_v61 = vld [vmem:[%s7763_s1 + $0x528] ss:$16 sps:$4 sm:$0xff]   ;;  %v5600_v62 = vld [vmem:[%s7763_s1 + $0x544] ss:$16 sps:$4 sm:$0xff]  }
  0x70   :  { %1715 = vmatprep.subr.bf16.mxu0 %v5516_v63  ;;  %1879 = vmatprep.subr.bf16.mxu1 %v5519_v0  ;;  %v5603_v63 = vld [vmem:[%s7763_s1 + $0x54c] ss:$16 sps:$4 sm:$0xff]   ;;  %v5598_v0 = vld [vmem:[%s7763_s1 + $0x540] ss:$16 sps:$4 sm:$0xff]  }
  0x73   :  { %1716 = vmatpush1.bf16.msra.mxu0 %v5514_v1  ;;  %1880 = vmatpush1.bf16.msra.mxu1 %v5517_v2  ;;  %v5601_v1 = vld [vmem:[%s7763_s1 + $0x548] ss:$16 sps:$4 sm:$0xff]   ;;  %v5606_v2 = vld [vmem:[%s7763_s1 + $0x564] ss:$16 sps:$4 sm:$0xff]  }
  0x74   :  { %1717 = vmatprep.subr.bf16.mxu0 %v5522_v3  ;;  %1881 = vmatprep.subr.bf16.mxu1 %v5525_v4  ;;  %v5609_v3 = vld [vmem:[%s7763_s1 + $0x56c] ss:$16 sps:$4 sm:$0xff]   ;;  %v5604_v4 = vld [vmem:[%s7763_s1 + $0x560] ss:$16 sps:$4 sm:$0xff]  }
  0x77   :  { %1718 = vmatpush1.bf16.msra.mxu0 %v5520_v5  ;;  %1882 = vmatpush1.bf16.msra.mxu1 %v5523_v6  ;;  %v5607_v5 = vld [vmem:[%s7763_s1 + $0x568] ss:$16 sps:$4 sm:$0xff]   ;;  %v5612_v6 = vld [vmem:[%s7763_s1 + $0x584] ss:$16 sps:$4 sm:$0xff]  }
  0x78   :  { %1719 = vmatprep.subr.bf16.mxu0 %v5528_v7  ;;  %1883 = vmatprep.subr.bf16.mxu1 %v5531_v8  ;;  %v5615_v7 = vld [vmem:[%s7763_s1 + $0x58c] ss:$16 sps:$4 sm:$0xff]   ;;  %v5610_v8 = vld [vmem:[%s7763_s1 + $0x580] ss:$16 sps:$4 sm:$0xff]  }
  0x7b   :  { %1720 = vmatpush1.bf16.msra.mxu0 %v5526_v10  ;;  %1884 = vmatpush1.bf16.msra.mxu1 %v5529_v11  ;;  %v5618_v10 = vld [vmem:[%s7763_s1 + $0x5a4] ss:$16 sps:$4 sm:$0xff]   ;;  %v5621_v11 = vld [vmem:[%s7763_s1 + $0x5ac] ss:$16 sps:$4 sm:$0xff]  }
  0x7c   :  { %1721 = vmatprep.subr.bf16.mxu0 %v5534_v12  ;;  %1885 = vmatprep.subr.bf16.mxu1 %v5537_v52  ;;  %v5616_v12 = vld [vmem:[%s7763_s1 + $0x5a0] ss:$16 sps:$4 sm:$0xff]   ;;  %v5619_v52 = vld [vmem:[%s7763_s1 + $0x5a8] ss:$16 sps:$4 sm:$0xff]  }
  0x7f   :  { %1722 = vmatpush1.bf16.msra.mxu0 %v5532_v15  ;;  %1886 = vmatpush1.bf16.msra.mxu1 %v5535_v16  ;;  %v5624_v15 = vld [vmem:[%s7763_s1 + $0x5c4] ss:$16 sps:$4 sm:$0xff]   ;;  %v5627_v16 = vld [vmem:[%s7763_s1 + $0x5cc] ss:$16 sps:$4 sm:$0xff]  }
  0x80   :  { %1732 = vmatprep.subr.bf16.mxu0 %v5540_v17  ;;  %1896 = vmatprep.subr.bf16.mxu1 %v5543_v18  ;;  %v5622_v17 = vld [vmem:[%s7763_s1 + $0x5c0] ss:$16 sps:$4 sm:$0xff]   ;;  %v5625_v18 = vld [vmem:[%s7763_s1 + $0x5c8] ss:$16 sps:$4 sm:$0xff]  }
  0x82   :  { %1724 = vmatmul.mubr.bf16.vlgmr.msra.gmra.mrb[0].mxu0 %v358_v21  ;;  %1888 = vmatmul.mubr.bf16.vlgmr.msra.gmra.mrb[0].mxu1 %v358_v21  ;;  %v5628_v21 = vld [vmem:[%s7763_s1 + $0x5e0] ss:$16 sps:$4 sm:$0xff]  }
  0x83   :  { %1733 = vmatpush1.bf16.msra.mxu0 %v5538_v20  ;;  %1897 = vmatpush1.bf16.msra.mxu1 %v5541_v22  ;;  %v5633_v20 = vld [vmem:[%s7763_s1 + $0x5ec] ss:$16 sps:$4 sm:$0xff]   ;;  %v5631_v22 = vld [vmem:[%s7763_s1 + $0x5e8] ss:$16 sps:$4 sm:$0xff]  }
  0x84   :  { %1734 = vmatprep.subr.bf16.mxu0 %v5546_v23  ;;  %1898 = vmatprep.subr.bf16.mxu1 %v5549_v24  ;;  %v5637_v23 = vld [vmem:[%s7763_s1 + $0x604] ss:$16 sps:$4 sm:$0xff]   ;;  %v5640_v24 = vld [vmem:[%s7763_s1 + $0x60c] ss:$16 sps:$4 sm:$0xff]  }
  0x85   :  { %1764 = vmatprep.mubr.bf16.mxu0 %v6325_v25  ;;  %1928 = vmatprep.mubr.bf16.mxu1 %v6325_v25 }
  0x87   :  { %1735 = vmatpush1.bf16.msra.mxu0 %v5544_v13  ;;  %1899 = vmatpush1.bf16.msra.mxu1 %v5547_v26  ;;  %v5635_v13 = vld [vmem:[%s7763_s1 + $0x600] ss:$16 sps:$4 sm:$0xff]   ;;  %v5638_v26 = vld [vmem:[%s7763_s1 + $0x608] ss:$16 sps:$4 sm:$0xff]  }
  0x88   :  { %1736 = vmatprep.subr.bf16.mxu0 %v5552_v27  ;;  %1900 = vmatprep.subr.bf16.mxu1 %v5555_v28  ;;  %v6517_v27 = vrot.slane %v6294_v14, %v6030_v49  ;;  %v5643_v28 = vld [vmem:[%s7763_s1 + $0x624] ss:$16 sps:$4 sm:$0xff]   ;;  %v5644_v14 = vld [vmem:[%s7763_s1 + $0x628] ss:$16 sps:$4 sm:$0xff]  }
  0x8b   :  { %1737 = vmatpush1.bf16.msra.mxu0 %v5550_v29  ;;  %1901 = vmatpush1.bf16.msra.mxu1 %v5553_v30  ;;  %v5646_v29 = vld [vmem:[%s7763_s1 + $0x62c] ss:$16 sps:$4 sm:$0xff]   ;;  %v5641_v30 = vld [vmem:[%s7763_s1 + $0x620] ss:$16 sps:$4 sm:$0xff]  }
  0x8c   :  { %1738 = vmatprep.subr.bf16.mxu0 %v5558_v31  ;;  %1902 = vmatprep.subr.bf16.mxu1 %v5561_v32  ;;  %v361_v31 = vcombine.high %v6325_v25, %v6325_v25  ;;  %v5649_v32 = vld [vmem:[%s7763_s1 + $0x644] ss:$16 sps:$4 sm:$0xff]   ;;  %v5647_v25 = vld [vmem:[%s7763_s1 + $0x640] ss:$16 sps:$4 sm:$0xff]  }
  0x8f   :  { %1739 = vmatpush1.bf16.msra.mxu0 %v5556_v33  ;;  %1903 = vmatpush1.bf16.msra.mxu1 %v5559_v34  ;;  %v5652_v33 = vld [vmem:[%s7763_s1 + $0x64c] ss:$16 sps:$4 sm:$0xff]   ;;  %v5650_v34 = vld [vmem:[%s7763_s1 + $0x648] ss:$16 sps:$4 sm:$0xff]  }
  0x90   :  { %1740 = vmatprep.subr.bf16.mxu0 %v5564_v35  ;;  %1904 = vmatprep.subr.bf16.mxu1 %v5567_v36  ;;  %v5655_v35 = vld [vmem:[%s7763_s1 + $0x664] ss:$16 sps:$4 sm:$0xff]   ;;  %v5658_v36 = vld [vmem:[%s7763_s1 + $0x66c] ss:$16 sps:$4 sm:$0xff]  }
  0x93   :  { %1741 = vmatpush1.bf16.msra.mxu0 %v5562_v37  ;;  %1905 = vmatpush1.bf16.msra.mxu1 %v5565_v38  ;;  %v5653_v37 = vld [vmem:[%s7763_s1 + $0x660] ss:$16 sps:$4 sm:$0xff]   ;;  %v5656_v38 = vld [vmem:[%s7763_s1 + $0x668] ss:$16 sps:$4 sm:$0xff]  }
  0x94   :  { %1742 = vmatprep.subr.bf16.mxu0 %v5570_v39  ;;  %1906 = vmatprep.subr.bf16.mxu1 %v5573_v40  ;;  %v5661_v39 = vld [vmem:[%s7763_s1 + $0x684] ss:$16 sps:$4 sm:$0xff]   ;;  %v5664_v40 = vld [vmem:[%s7763_s1 + $0x68c] ss:$16 sps:$4 sm:$0xff]  }
  0x97   :  { %1743 = vmatpush1.bf16.msra.mxu0 %v5568_v41  ;;  %1907 = vmatpush1.bf16.msra.mxu1 %v5571_v43  ;;  %v5659_v41 = vld [vmem:[%s7763_s1 + $0x680] ss:$16 sps:$4 sm:$0xff]   ;;  %v5662_v43 = vld [vmem:[%s7763_s1 + $0x688] ss:$16 sps:$4 sm:$0xff]  }
  0x98   :  { %1744 = vmatprep.subr.bf16.mxu0 %v5576_v44  ;;  %1908 = vmatprep.subr.bf16.mxu1 %v5579_v45  ;;  %v5667_v44 = vld [vmem:[%s7763_s1 + $0x6a4] ss:$16 sps:$4 sm:$0xff]   ;;  %v5670_v45 = vld [vmem:[%s7763_s1 + $0x6ac] ss:$16 sps:$4 sm:$0xff]  }
  0x9b   :  { %1745 = vmatpush1.bf16.msra.mxu0 %v5574_v46  ;;  %1909 = vmatpush1.bf16.msra.mxu1 %v5577_v47  ;;  %v5665_v46 = vld [vmem:[%s7763_s1 + $0x6a0] ss:$16 sps:$4 sm:$0xff]   ;;  %v5668_v47 = vld [vmem:[%s7763_s1 + $0x6a8] ss:$16 sps:$4 sm:$0xff]  }
  0x9c   :  { %1746 = vmatprep.subr.bf16.mxu0 %v5582_v48  ;;  %1910 = vmatprep.subr.bf16.mxu1 %v5585_v50  ;;  %v5673_v48 = vld [vmem:[%s7763_s1 + $0x6c4] ss:$16 sps:$4 sm:$0xff]   ;;  %v5676_v50 = vld [vmem:[%s7763_s1 + $0x6cc] ss:$16 sps:$4 sm:$0xff]  }
  0x9f   :  { %1747 = vmatpush1.bf16.msra.mxu0 %v5580_v51  ;;  %1911 = vmatpush1.bf16.msra.mxu1 %v5583_v53  ;;  %v5671_v51 = vld [vmem:[%s7763_s1 + $0x6c0] ss:$16 sps:$4 sm:$0xff]   ;;  %v5674_v53 = vld [vmem:[%s7763_s1 + $0x6c8] ss:$16 sps:$4 sm:$0xff]  }
  0xa0   :  { %1748 = vmatprep.subr.bf16.mxu0 %v5588_v54  ;;  %1912 = vmatprep.subr.bf16.mxu1 %v5591_v55  ;;  %v5679_v54 = vld [vmem:[%s7763_s1 + $0x6e4] ss:$16 sps:$4 sm:$0xff]   ;;  %v5682_v55 = vld [vmem:[%s7763_s1 + $0x6ec] ss:$16 sps:$4 sm:$0xff]  }
  0xa3   :  { %1749 = vmatpush1.bf16.msra.mxu0 %v5586_v56  ;;  %1913 = vmatpush1.bf16.msra.mxu1 %v5589_v57  ;;  %v5677_v56 = vld [vmem:[%s7763_s1 + $0x6e0] ss:$16 sps:$4 sm:$0xff]   ;;  %v5680_v57 = vld [vmem:[%s7763_s1 + $0x6e8] ss:$16 sps:$4 sm:$0xff]  }
  0xa4   :  { %1750 = vmatprep.subr.bf16.mxu0 %v5594_v58  ;;  %1914 = vmatprep.subr.bf16.mxu1 %v5597_v59  ;;  %v5685_v58 = vld [vmem:[%s7763_s1 + $0x704] ss:$16 sps:$4 sm:$0xff]   ;;  %v5688_v59 = vld [vmem:[%s7763_s1 + $0x70c] ss:$16 sps:$4 sm:$0xff]  }
  0xa7   :  { %1751 = vmatpush1.bf16.msra.mxu0 %v5592_v60  ;;  %1915 = vmatpush1.bf16.msra.mxu1 %v5595_v61  ;;  %v5683_v60 = vld [vmem:[%s7763_s1 + $0x700] ss:$16 sps:$4 sm:$0xff]   ;;  %v5686_v61 = vld [vmem:[%s7763_s1 + $0x708] ss:$16 sps:$4 sm:$0xff]  }
  0xa8   :  { %1752 = vmatprep.subr.bf16.mxu0 %v5600_v62  ;;  %1916 = vmatprep.subr.bf16.mxu1 %v5603_v63  ;;  %v5691_v62 = vld [vmem:[%s7763_s1 + $0x724] ss:$16 sps:$4 sm:$0xff]   ;;  %v5694_v63 = vld [vmem:[%s7763_s1 + $0x72c] ss:$16 sps:$4 sm:$0xff]  }
  0xab   :  { %1753 = vmatpush1.bf16.msra.mxu0 %v5598_v0  ;;  %1917 = vmatpush1.bf16.msra.mxu1 %v5601_v1  ;;  %v5689_v0 = vld [vmem:[%s7763_s1 + $0x720] ss:$16 sps:$4 sm:$0xff]   ;;  %v5692_v1 = vld [vmem:[%s7763_s1 + $0x728] ss:$16 sps:$4 sm:$0xff]  }
  0xac   :  { %1754 = vmatprep.subr.bf16.mxu0 %v5606_v2  ;;  %1918 = vmatprep.subr.bf16.mxu1 %v5609_v3  ;;  %v5697_v2 = vld [vmem:[%s7763_s1 + $0x744] ss:$16 sps:$4 sm:$0xff]   ;;  %v5700_v3 = vld [vmem:[%s7763_s1 + $0x74c] ss:$16 sps:$4 sm:$0xff]  }
  0xaf   :  { %1755 = vmatpush1.bf16.msra.mxu0 %v5604_v4  ;;  %1919 = vmatpush1.bf16.msra.mxu1 %v5607_v5  ;;  %v5695_v4 = vld [vmem:[%s7763_s1 + $0x740] ss:$16 sps:$4 sm:$0xff]   ;;  %v5698_v5 = vld [vmem:[%s7763_s1 + $0x748] ss:$16 sps:$4 sm:$0xff]  }
  0xb0   :  { %1756 = vmatprep.subr.bf16.mxu0 %v5612_v6  ;;  %1920 = vmatprep.subr.bf16.mxu1 %v5615_v7  ;;  %v5703_v6 = vld [vmem:[%s7763_s1 + $0x764] ss:$16 sps:$4 sm:$0xff]   ;;  %v5706_v7 = vld [vmem:[%s7763_s1 + $0x76c] ss:$16 sps:$4 sm:$0xff]  }
  0xb3   :  { %1757 = vmatpush1.bf16.msra.mxu0 %v5610_v8  ;;  %1921 = vmatpush1.bf16.msra.mxu1 %v5613_v9  ;;  %v5701_v8 = vld [vmem:[%s7763_s1 + $0x760] ss:$16 sps:$4 sm:$0xff]   ;;  %v5704_v9 = vld [vmem:[%s7763_s1 + $0x768] ss:$16 sps:$4 sm:$0xff]  }
  0xb4   :  { %1758 = vmatprep.subr.bf16.mxu0 %v5618_v10  ;;  %1922 = vmatprep.subr.bf16.mxu1 %v5621_v11  ;;  %v5709_v10 = vld [vmem:[%s7763_s1 + $0x784] ss:$16 sps:$4 sm:$0xff]   ;;  %v5712_v11 = vld [vmem:[%s7763_s1 + $0x78c] ss:$16 sps:$4 sm:$0xff]  }
  0xb7   :  { %1759 = vmatpush1.bf16.msra.mxu0 %v5616_v12  ;;  %1923 = vmatpush1.bf16.msra.mxu1 %v5619_v52  ;;  %v5707_v12 = vld [vmem:[%s7763_s1 + $0x780] ss:$16 sps:$4 sm:$0xff]   ;;  %v5710_v52 = vld [vmem:[%s7763_s1 + $0x788] ss:$16 sps:$4 sm:$0xff]  }
  0xb8   :  { %1760 = vmatprep.subr.bf16.mxu0 %v5624_v15  ;;  %1924 = vmatprep.subr.bf16.mxu1 %v5627_v16  ;;  %v5715_v15 = vld [vmem:[%s7763_s1 + $0x7a4] ss:$16 sps:$4 sm:$0xff]   ;;  %v5718_v16 = vld [vmem:[%s7763_s1 + $0x7ac] ss:$16 sps:$4 sm:$0xff]  }
  0xbb   :  { %1761 = vmatpush1.bf16.msra.mxu0 %v5622_v17  ;;  %1925 = vmatpush1.bf16.msra.mxu1 %v5625_v18  ;;  %v5713_v17 = vld [vmem:[%s7763_s1 + $0x7a0] ss:$16 sps:$4 sm:$0xff]   ;;  %v5716_v18 = vld [vmem:[%s7763_s1 + $0x7a8] ss:$16 sps:$4 sm:$0xff]  }
  0xbc   :  { %1762 = vmatprep.subr.bf16.mxu0 %v5630_v19  ;;  %1926 = vmatprep.subr.bf16.mxu1 %v5633_v20  ;;  %v5721_v19 = vld [vmem:[%s7763_s1 + $0x7c4] ss:$16 sps:$4 sm:$0xff]   ;;  %v5724_v20 = vld [vmem:[%s7763_s1 + $0x7cc] ss:$16 sps:$4 sm:$0xff]  }
  0xbf   :  { %1763 = vmatpush1.bf16.msra.mxu0 %v5628_v21  ;;  %1927 = vmatpush1.bf16.msra.mxu1 %v5631_v22  ;;  %v5719_v21 = vld [vmem:[%s7763_s1 + $0x7c0] ss:$16 sps:$4 sm:$0xff]   ;;  %v5722_v22 = vld [vmem:[%s7763_s1 + $0x7c8] ss:$16 sps:$4 sm:$0xff]  }
  0xc0   :  { %1773 = vmatprep.subr.bf16.mxu0 %v5637_v23  ;;  %1937 = vmatprep.subr.bf16.mxu1 %v5640_v24  ;;  %v5727_v23 = vld [vmem:[%s7763_s1 + $0x7e4] ss:$16 sps:$4 sm:$0xff]   ;;  %v5730_v24 = vld [vmem:[%s7763_s1 + $0x7ec] ss:$16 sps:$4 sm:$0xff]  }
  0xc2   :  { %1765 = vmatmul.mubr.bf16.vlgmr.msra.gmra.mrb[0].mxu0 %v6517_v27  ;;  %1929 = vmatmul.mubr.bf16.vlgmr.msra.gmra.mrb[0].mxu1 %v6517_v27 }
  0xc3   :  { %1774 = vmatpush1.bf16.msra.mxu0 %v5635_v13  ;;  %1938 = vmatpush1.bf16.msra.mxu1 %v5638_v26  ;;  %v5725_v13 = vld [vmem:[%s7763_s1 + $0x7e0] ss:$16 sps:$4 sm:$0xff]   ;;  %v5728_v26 = vld [vmem:[%s7763_s1 + $0x7e8] ss:$16 sps:$4 sm:$0xff]  }
  0xc4   :  { %1775 = vmatprep.subr.bf16.mxu0 %v5643_v28  ;;  %1939 = vmatprep.subr.bf16.mxu1 %v5646_v29  ;;  %v5731_v28 = vld [vmem:[%s7765_s3 + $0x40] sm:$0xff]  }
  0xc5   :  { %1805 = vmatprep.mubr.bf16.mxu0 %v361_v31  ;;  %1969 = vmatprep.mubr.bf16.mxu1 %v361_v31  ;;  %v5732_v29 = vld [vmem:[%s7765_s3 + $0xc0] sm:$0xff]  }
  0xc6   :  { %v5734_v31 = vld [vmem:[%s7765_s3 + $0x80] sm:$0xff]  }
  0xc7   :  { %1776 = vmatpush1.bf16.msra.mxu0 %v5641_v30  ;;  %1940 = vmatpush1.bf16.msra.mxu1 %v5644_v14  ;;  %v359_v30 = vcombine.high %v6517_v27, %v6517_v27  ;;  %v5733_v14 = vld [vmem:[%s7765_s3] sm:$0xff]   ;;  %v5736_v27 = vld [vmem:[%s7765_s3 + $0xc8] sm:$0xff]  }
  0xc8   :  { %1777 = vmatprep.subr.bf16.mxu0 %v5649_v32  ;;  %1941 = vmatprep.subr.bf16.mxu1 %v5652_v33  ;;  %v5735_v32 = vld [vmem:[%s7765_s3 + $0x48] sm:$0xff]  }
  0xc9   :  { %v5737_v33 = vld [vmem:[%s7765_s3 + $0x8] sm:$0xff]  }
  0xcb   :  { %1778 = vmatpush1.bf16.msra.mxu0 %v5647_v25  ;;  %1942 = vmatpush1.bf16.msra.mxu1 %v5650_v34  ;;  %v5738_v25 = vld [vmem:[%s7765_s3 + $0x88] sm:$0xff]   ;;  %v5739_v34 = vld [vmem:[%s7765_s3 + $0x50] sm:$0xff]  }
  0xcc   :  { %1779 = vmatprep.subr.bf16.mxu0 %v5655_v35  ;;  %1943 = vmatprep.subr.bf16.mxu1 %v5658_v36  ;;  %v5740_v35 = vld [vmem:[%s7765_s3 + $0xd0] sm:$0xff]  }
  0xcd   :  { %v5741_v36 = vld [vmem:[%s7765_s3 + $0x10] sm:$0xff]  }
  0xcf   :  { %1780 = vmatpush1.bf16.msra.mxu0 %v5653_v37  ;;  %1944 = vmatpush1.bf16.msra.mxu1 %v5656_v38  ;;  %v5742_v37 = vld [vmem:[%s7765_s3 + $0x90] sm:$0xff]   ;;  %v5743_v38 = vld [vmem:[%s7765_s3 + $0x58] sm:$0xff]  }
  0xd0   :  { %1781 = vmatprep.subr.bf16.mxu0 %v5661_v39  ;;  %1945 = vmatprep.subr.bf16.mxu1 %v5664_v40  ;;  %v5744_v39 = vld [vmem:[%s7765_s3 + $0xd8] sm:$0xff]  }
  0xd1   :  { %v5745_v40 = vld [vmem:[%s7765_s3 + $0x18] sm:$0xff]  }
  0xd3   :  { %1782 = vmatpush1.bf16.msra.mxu0 %v5659_v41  ;;  %1946 = vmatpush1.bf16.msra.mxu1 %v5662_v43  ;;  %v5746_v41 = vld [vmem:[%s7765_s3 + $0x98] sm:$0xff]   ;;  %v5747_v43 = vld [vmem:[%s7765_s3 + $0x60] sm:$0xff]  }
  0xd4   :  { %1783 = vmatprep.subr.bf16.mxu0 %v5667_v44  ;;  %1947 = vmatprep.subr.bf16.mxu1 %v5670_v45  ;;  %v5748_v44 = vld [vmem:[%s7765_s3 + $0xe0] sm:$0xff]  }
  0xd5   :  { %v5749_v45 = vld [vmem:[%s7765_s3 + $0x20] sm:$0xff]  }
  0xd7   :  { %1784 = vmatpush1.bf16.msra.mxu0 %v5665_v46  ;;  %1948 = vmatpush1.bf16.msra.mxu1 %v5668_v47  ;;  %v5750_v46 = vld [vmem:[%s7765_s3 + $0xa0] sm:$0xff]   ;;  %v5751_v47 = vld [vmem:[%s7765_s3 + $0x68] sm:$0xff]  }
  0xd8   :  { %1785 = vmatprep.subr.bf16.mxu0 %v5673_v48  ;;  %1949 = vmatprep.subr.bf16.mxu1 %v5676_v50  ;;  %v5752_v48 = vld [vmem:[%s7765_s3 + $0xe8] sm:$0xff]  }
  0xd9   :  { %v5753_v50 = vld [vmem:[%s7765_s3 + $0x28] sm:$0xff]  }
  0xdb   :  { %1786 = vmatpush1.bf16.msra.mxu0 %v5671_v51  ;;  %1950 = vmatpush1.bf16.msra.mxu1 %v5674_v53  ;;  %v5754_v51 = vld [vmem:[%s7765_s3 + $0xa8] sm:$0xff]   ;;  %v5755_v53 = vld [vmem:[%s7765_s3 + $0x70] sm:$0xff]  }
  0xdc   :  { %1787 = vmatprep.subr.bf16.mxu0 %v5679_v54  ;;  %1951 = vmatprep.subr.bf16.mxu1 %v5682_v55  ;;  %v5756_v54 = vld [vmem:[%s7765_s3 + $0xf0] sm:$0xff]  }
  0xdd   :  { %v5757_v55 = vld [vmem:[%s7765_s3 + $0x30] sm:$0xff]  }
  0xdf   :  { %1788 = vmatpush1.bf16.msra.mxu0 %v5677_v56  ;;  %1952 = vmatpush1.bf16.msra.mxu1 %v5680_v57  ;;  %v5758_v56 = vld [vmem:[%s7765_s3 + $0xb0] sm:$0xff]   ;;  %v5759_v57 = vld [vmem:[%s7765_s3 + $0x78] sm:$0xff]  }
  0xe0   :  { %1789 = vmatprep.subr.bf16.mxu0 %v5685_v58  ;;  %1953 = vmatprep.subr.bf16.mxu1 %v5688_v59  ;;  %v5760_v58 = vld [vmem:[%s7765_s3 + $0xf8] sm:$0xff]  }
  0xe1   :  { %v5761_v59 = vld [vmem:[%s7765_s3 + $0x38] sm:$0xff]  }
  0xe3   :  { %1790 = vmatpush1.bf16.msra.mxu0 %v5683_v60  ;;  %1954 = vmatpush1.bf16.msra.mxu1 %v5686_v61  ;;  %v5762_v60 = vld [vmem:[%s7765_s3 + $0xb8] sm:$0xff]   ;;  %v5765_v61 = vld [vmem:[%s7766_s5 + $0x4] ss:$16 sps:$4 sm:$0xff]  }
  0xe4   :  { %1791 = vmatprep.subr.bf16.mxu0 %v5691_v62  ;;  %1955 = vmatprep.subr.bf16.mxu1 %v5694_v63  ;;  %v5768_v62 = vld [vmem:[%s7766_s5 + $0xc] ss:$16 sps:$4 sm:$0xff]   ;;  %v6808_v63 = vsub.s32 0, %v6012_v42 }
  0xe7   :  { %1792 = vmatpush1.bf16.msra.mxu0 %v5689_v0  ;;  %1956 = vmatpush1.bf16.msra.mxu1 %v5692_v1  ;;  %v6811_v0 = vsub.s32 2, %v6012_v42  ;;  %v290_v1 = vld [vmem:[%s7767_s2] sm:$0xf] }
  0xe8   :  { %1793 = vmatprep.subr.bf16.mxu0 %v5697_v2  ;;  %1957 = vmatprep.subr.bf16.mxu1 %v5700_v3  ;;  %v6817_v2 = vsub.s32 1, %v6012_v42  ;;  %v6820_v3 = vsub.s32 3, %v6012_v42 }
  0xeb   :  { %1794 = vmatpush1.bf16.msra.mxu0 %v5695_v4  ;;  %1958 = vmatpush1.bf16.msra.mxu1 %v5698_v5  ;;  %v295_v4 = vrot.slane %v290_v1, %v6808_v63  ;;  %v303_v5 = vrot.slane %v290_v1, %v6811_v0 }
  0xec   :  { %1795 = vmatprep.subr.bf16.mxu0 %v5703_v6  ;;  %1959 = vmatprep.subr.bf16.mxu1 %v5706_v7  ;;  %v299_v6 = vrot.slane %v290_v1, %v6817_v2  ;;  %v307_v7 = vrot.slane %v290_v1, %v6820_v3  ;;  %v2635_v1 = vld [vmem:[%s7768_s7 + $0x8] sm:$0xff] }
  0xef   :  { %1796 = vmatpush1.bf16.msra.mxu0 %v5701_v8  ;;  %1960 = vmatpush1.bf16.msra.mxu1 %v5704_v9 }
  0xf0   :  { %1797 = vmatprep.subr.bf16.mxu0 %v5709_v10  ;;  %1961 = vmatprep.subr.bf16.mxu1 %v5712_v11 }
  0xf3   :  { %1798 = vmatpush1.bf16.msra.mxu0 %v5707_v12  ;;  %1962 = vmatpush1.bf16.msra.mxu1 %v5710_v52 }
  0xf4   :  { %1799 = vmatprep.subr.bf16.mxu0 %v5715_v15  ;;  %1963 = vmatprep.subr.bf16.mxu1 %v5718_v16 }
  0xf7   :  { %1800 = vmatpush1.bf16.msra.mxu0 %v5713_v17  ;;  %1964 = vmatpush1.bf16.msra.mxu1 %v5716_v18 }
  0xf8   :  { %1801 = vmatprep.subr.bf16.mxu0 %v5721_v19  ;;  %1965 = vmatprep.subr.bf16.mxu1 %v5724_v20 }
  0xfb   :  { %1802 = vmatpush1.bf16.msra.mxu0 %v5719_v21  ;;  %1966 = vmatpush1.bf16.msra.mxu1 %v5722_v22 }
  0xfc   :  { %1803 = vmatprep.subr.bf16.mxu0 %v5727_v23  ;;  %1967 = vmatprep.subr.bf16.mxu1 %v5730_v24 }
  0xff   :  { %1804 = vmatpush1.bf16.msra.mxu0 %v5725_v13  ;;  %1968 = vmatpush1.bf16.msra.mxu1 %v5728_v26 }
 0x100   :  { %5248 = vmatprep.subr.bf16.mxu0 %v5731_v28  ;;  %5270 = vmatprep.subr.bf16.mxu1 %v5732_v29  ;;  %v5763_v28 = vld [vmem:[%s7766_s5] ss:$16 sps:$4 sm:$0xff]   ;;  %v5766_v29 = vld [vmem:[%s7766_s5 + $0x8] ss:$16 sps:$4 sm:$0xff]  }
 0x102   :  { %1806 = vmatmul.mubr.bf16.vlgmr.msra.gmra.mrb[0].mxu0 %v359_v30  ;;  %1970 = vmatmul.mubr.bf16.vlgmr.msra.gmra.mrb[0].mxu1 %v359_v30 }
 0x103   :  { %5249 = vmatpush3.bf16.msra.mxu0 %v5733_v14  ;;  %5271 = vmatpush3.bf16.msra.mxu1 %v5734_v31  ;;  %v5771_v31 = vld [vmem:[%s7766_s5 + $0x24] ss:$16 sps:$4 sm:$0xff]  }
 0x104   :  { %5250 = vmatprep.subr.bf16.mxu0 %v5735_v32  ;;  %5272 = vmatprep.subr.bf16.mxu1 %v5736_v27  ;;  %v5774_v32 = vld [vmem:[%s7766_s5 + $0x2c] ss:$16 sps:$4 sm:$0xff]   ;;  %v5769_v27 = vld [vmem:[%s7766_s5 + $0x20] ss:$16 sps:$4 sm:$0xff]  }
 0x107   :  { %5251 = vmatpush3.bf16.msra.mxu0 %v5737_v33  ;;  %5273 = vmatpush3.bf16.msra.mxu1 %v5738_v25  ;;  %v5772_v33 = vld [vmem:[%s7766_s5 + $0x28] ss:$16 sps:$4 sm:$0xff]   ;;  %v5777_v25 = vld [vmem:[%s7766_s5 + $0x44] ss:$16 sps:$4 sm:$0xff]  }
 0x108   :  { %5252 = vmatprep.subr.bf16.mxu0 %v5739_v34  ;;  %5274 = vmatprep.subr.bf16.mxu1 %v5740_v35  ;;  %v5780_v34 = vld [vmem:[%s7766_s5 + $0x4c] ss:$16 sps:$4 sm:$0xff]   ;;  %v5775_v35 = vld [vmem:[%s7766_s5 + $0x40] ss:$16 sps:$4 sm:$0xff]  }
 0x10b   :  { %5253 = vmatpush3.bf16.msra.mxu0 %v5741_v36  ;;  %5275 = vmatpush3.bf16.msra.mxu1 %v5742_v37  ;;  %v5778_v36 = vld [vmem:[%s7766_s5 + $0x48] ss:$16 sps:$4 sm:$0xff]   ;;  %v5783_v37 = vld [vmem:[%s7766_s5 + $0x64] ss:$16 sps:$4 sm:$0xff]  }
 0x10c   :  { %5254 = vmatprep.subr.bf16.mxu0 %v5743_v38  ;;  %5276 = vmatprep.subr.bf16.mxu1 %v5744_v39  ;;  %v5786_v38 = vld [vmem:[%s7766_s5 + $0x6c] ss:$16 sps:$4 sm:$0xff]   ;;  %v5781_v39 = vld [vmem:[%s7766_s5 + $0x60] ss:$16 sps:$4 sm:$0xff]  }
 0x10f   :  { %5255 = vmatpush3.bf16.msra.mxu0 %v5745_v40  ;;  %5277 = vmatpush3.bf16.msra.mxu1 %v5746_v41  ;;  %v5784_v40 = vld [vmem:[%s7766_s5 + $0x68] ss:$16 sps:$4 sm:$0xff]   ;;  %v5789_v41 = vld [vmem:[%s7766_s5 + $0x84] ss:$16 sps:$4 sm:$0xff]  }
 0x110   :  { %5256 = vmatprep.subr.bf16.mxu0 %v5747_v43  ;;  %5278 = vmatprep.subr.bf16.mxu1 %v5748_v44  ;;  %v5792_v43 = vld [vmem:[%s7766_s5 + $0x8c] ss:$16 sps:$4 sm:$0xff]   ;;  %v5787_v44 = vld [vmem:[%s7766_s5 + $0x80] ss:$16 sps:$4 sm:$0xff]  }
 0x113   :  { %5257 = vmatpush3.bf16.msra.mxu0 %v5749_v45  ;;  %5279 = vmatpush3.bf16.msra.mxu1 %v5750_v46  ;;  %v5790_v45 = vld [vmem:[%s7766_s5 + $0x88] ss:$16 sps:$4 sm:$0xff]   ;;  %v5795_v46 = vld [vmem:[%s7766_s5 + $0xa4] ss:$16 sps:$4 sm:$0xff]  }
 0x114   :  { %5258 = vmatprep.subr.bf16.mxu0 %v5751_v47  ;;  %5280 = vmatprep.subr.bf16.mxu1 %v5752_v48  ;;  %v5798_v47 = vld [vmem:[%s7766_s5 + $0xac] ss:$16 sps:$4 sm:$0xff]   ;;  %v5793_v48 = vld [vmem:[%s7766_s5 + $0xa0] ss:$16 sps:$4 sm:$0xff]  }
 0x117   :  { %5259 = vmatpush3.bf16.msra.mxu0 %v5753_v50  ;;  %5281 = vmatpush3.bf16.msra.mxu1 %v5754_v51  ;;  %v5796_v50 = vld [vmem:[%s7766_s5 + $0xa8] ss:$16 sps:$4 sm:$0xff]   ;;  %v5801_v51 = vld [vmem:[%s7766_s5 + $0xc4] ss:$16 sps:$4 sm:$0xff]  }
 0x118   :  { %5260 = vmatprep.subr.bf16.mxu0 %v5755_v53  ;;  %5282 = vmatprep.subr.bf16.mxu1 %v5756_v54  ;;  %v5804_v53 = vld [vmem:[%s7766_s5 + $0xcc] ss:$16 sps:$4 sm:$0xff]   ;;  %v5799_v54 = vld [vmem:[%s7766_s5 + $0xc0] ss:$16 sps:$4 sm:$0xff]  }
 0x11b   :  { %5261 = vmatpush3.bf16.msra.mxu0 %v5757_v55  ;;  %5283 = vmatpush3.bf16.msra.mxu1 %v5758_v56  ;;  %v5802_v55 = vld [vmem:[%s7766_s5 + $0xc8] ss:$16 sps:$4 sm:$0xff]   ;;  %v5807_v56 = vld [vmem:[%s7766_s5 + $0xe4] ss:$16 sps:$4 sm:$0xff]  }
 0x11c   :  { %5262 = vmatprep.subr.bf16.mxu0 %v5759_v57  ;;  %5284 = vmatprep.subr.bf16.mxu1 %v5760_v58  ;;  %v5810_v57 = vld [vmem:[%s7766_s5 + $0xec] ss:$16 sps:$4 sm:$0xff]   ;;  %v5805_v58 = vld [vmem:[%s7766_s5 + $0xe0] ss:$16 sps:$4 sm:$0xff]  }
 0x11f   :  { %5263 = vmatpush3.bf16.msra.mxu0 %v5761_v59  ;;  %5285 = vmatpush3.bf16.msra.mxu1 %v5762_v60  ;;  %v5808_v59 = vld [vmem:[%s7766_s5 + $0xe8] ss:$16 sps:$4 sm:$0xff]   ;;  %v5844_v60 = vmov 0  }
 0x120   :  { %2544 = vmatprep.subr.bf16.mxu0 %v5765_v61  ;;  %2585 = vmatprep.subr.bf16.mxu1 %v5768_v62  ;;  %v2634_v61 = vld [vmem:[%s7768_s7] sm:$0xff] }
 0x121   :  { %v2638_v62 = vld [vmem:[%s7768_s7 + $0x20] sm:$0xff] }
 0x1d5   :  { %v1807_v8 = vpop.f32.mrb[0].mxu0  ;;  %v1971_v9 = vpop.f32.mrb[0].mxu1 }
 0x1d6   :  { %v5292_v10 = vadd.f32 %v1807_v8, %v295_v4  ;;  %v5294_v11 = vadd.f32 %v1971_v9, %v303_v5  ;;  %v1809_v12 = vpop.f32.mrb[1].mxu0  ;;  %v1973_v52 = vpop.f32.mrb[1].mxu1  ;;  %v4988_v4 = vcombine.low %v2634_v61, %v2638_v62  ;;  %v4989_v5 = vcombine.high %v2634_v61, %v2638_v62 }
 0x1d7   :  { %v5293_v15 = vadd.f32 %v1809_v12, %v299_v6  ;;  %v5295_v16 = vadd.f32 %v1973_v52, %v307_v7  ;;  %v1811_v17 = vpop.f32.mrb[2].mxu0  ;;  %v1975_v18 = vpop.f32.mrb[2].mxu1  ;;  %v2639_v6 = vld [vmem:[%s7768_s7 + $0x28] sm:$0xff] }
 0x1d8   :  { %v1978_v19 = vmax.f32 %v5292_v10, 0.0  ;;  %v1980_v20 = vmax.f32 %v5294_v11, 0.0  ;;  %v1812_v21 = vpop.f32.mrb[3].mxu0  ;;  %v1976_v22 = vpop.f32.mrb[3].mxu1  ;;  %v4990_v7 = vcombine.low %v2635_v1, %v2639_v6  ;;  %v4991_v8 = vcombine.high %v2635_v1, %v2639_v6  ;;  %v4923_v11 = vld [vmem:[%s7769_s4] ss:$0 sm:$0xff] }
 0x1d9   :  { %v1979_v23 = vmax.f32 %v5293_v15, 0.0  ;;  %v1981_v24 = vmax.f32 %v5295_v16, 0.0  ;;  %v2642_v22 = vld [vmem:[%s7768_s7 + $0x40] sm:$0xff]  ;;  %v2687_v6 = vld [vmem:[%s7768_s7 + $0x1a8] sm:$0xff] }
 0x1da   :  { %v1982_v30 = vpack.c.bf16 %v1978_v19, %v1978_v19  ;;  %v1984_v14 = vpack.c.bf16 %v1980_v20, %v1980_v20  ;;  %v2682_v1 = vld [vmem:[%s7768_s7 + $0x180] sm:$0xff] }
 0x1db   :  { %v1983_v13 = vpack.c.bf16 %v1979_v23, %v1979_v23  ;;  %v1985_v26 = vpack.c.bf16 %v1981_v24, %v1981_v24  ;;  %v2646_v23 = vld [vmem:[%s7768_s7 + $0x60] sm:$0xff]  ;;  %v2643_v24 = vld [vmem:[%s7768_s7 + $0x48] sm:$0xff] }
 0x1dd   :  { %2281 = vmatprep.mubr.bf16.mxu0 %v1983_v13  ;;  %2321 = vmatprep.mubr.bf16.mxu1 %v1985_v26  ;;  %v2647_v13 = vld [vmem:[%s7768_s7 + $0x68] sm:$0xff] }
 0x1de   :  { %2282 = vmatmul.mubr.bf16.vlgmr.msra.gmra.mrb[4].mxu0 %v1982_v30  ;;  %2322 = vmatmul.mubr.bf16.vlgmr.msra.gmra.mrb[4].mxu1 %v1984_v14  ;;  %v4999_v30 = vcombine.high %v2643_v24, %v2647_v13  ;;  %v2650_v14 = vld [vmem:[%s7768_s7 + $0x80] sm:$0xff] }
 0x1df   :  { %2545 = vmatpush1.bf16.msra.mxu0 %v5763_v28  ;;  %2586 = vmatpush1.bf16.msra.mxu1 %v5766_v29  ;;  %v4997_v29 = vcombine.high %v2642_v22, %v2646_v23 }
 0x1e0   :  { %2546 = vmatprep.subr.bf16.mxu0 %v5771_v31  ;;  %2587 = vmatprep.subr.bf16.mxu1 %v5774_v32  ;;  %v2654_v31 = vld [vmem:[%s7768_s7 + $0xa0] sm:$0xff]  ;;  %v2651_v32 = vld [vmem:[%s7768_s7 + $0x88] sm:$0xff] }
 0x1e1   :  { %2576 = vmatprep.mubr.bf16.mxu0 %v5844_v60  ;;  %2617 = vmatprep.mubr.bf16.mxu1 %v5844_v60 }
 0x1e3   :  { %2547 = vmatpush1.bf16.msra.mxu0 %v5769_v27  ;;  %2588 = vmatpush1.bf16.msra.mxu1 %v5772_v33  ;;  %v2655_v27 = vld [vmem:[%s7768_s7 + $0xa8] sm:$0xff]  ;;  %v4996_v33 = vcombine.low %v2642_v22, %v2646_v23 }
 0x1e4   :  { %2548 = vmatprep.subr.bf16.mxu0 %v5777_v25  ;;  %2589 = vmatprep.subr.bf16.mxu1 %v5780_v34  ;;  %v4998_v25 = vcombine.low %v2643_v24, %v2647_v13  ;;  %v5005_v34 = vcombine.high %v2650_v14, %v2654_v31  ;;  %v2699_v22 = vld [vmem:[%s7768_s7 + $0x208] sm:$0xff] }
 0x1e5   :  { %v2703_v23 = vld [vmem:[%s7768_s7 + $0x228] sm:$0xff] }
 0x1e7   :  { %2549 = vmatpush1.bf16.msra.mxu0 %v5775_v35  ;;  %2590 = vmatpush1.bf16.msra.mxu1 %v5778_v36  ;;  %v5007_v35 = vcombine.high %v2651_v32, %v2655_v27  ;;  %v2658_v36 = vld [vmem:[%s7768_s7 + $0xc0] sm:$0xff] }
 0x1e8   :  { %2550 = vmatprep.subr.bf16.mxu0 %v5783_v37  ;;  %2591 = vmatprep.subr.bf16.mxu1 %v5786_v38  ;;  %v2662_v37 = vld [vmem:[%s7768_s7 + $0xe0] sm:$0xff]  ;;  %v2659_v38 = vld [vmem:[%s7768_s7 + $0xc8] sm:$0xff] }
 0x1eb   :  { %2551 = vmatpush1.bf16.msra.mxu0 %v5781_v39  ;;  %2592 = vmatpush1.bf16.msra.mxu1 %v5784_v40  ;;  %v2663_v39 = vld [vmem:[%s7768_s7 + $0xe8] sm:$0xff]  ;;  %v5004_v40 = vcombine.low %v2650_v14, %v2654_v31 }
 0x1ec   :  { %2552 = vmatprep.subr.bf16.mxu0 %v5789_v41  ;;  %2593 = vmatprep.subr.bf16.mxu1 %v5792_v43  ;;  %v5006_v41 = vcombine.low %v2651_v32, %v2655_v27  ;;  %v5013_v43 = vcombine.high %v2658_v36, %v2662_v37  ;;  %v2707_v14 = vld [vmem:[%s7768_s7 + $0x248] sm:$0xff]  ;;  %v5054_v27 = vcombine.low %v2699_v22, %v2703_v23 }
 0x1ed   :  { %v2711_v31 = vld [vmem:[%s7768_s7 + $0x268] sm:$0xff] }
 0x1ef   :  { %2553 = vmatpush1.bf16.msra.mxu0 %v5787_v44  ;;  %2594 = vmatpush1.bf16.msra.mxu1 %v5790_v45  ;;  %v5015_v44 = vcombine.high %v2659_v38, %v2663_v39  ;;  %v2666_v45 = vld [vmem:[%s7768_s7 + $0x100] sm:$0xff] }
 0x1f0   :  { %2554 = vmatprep.subr.bf16.mxu0 %v5795_v46  ;;  %2595 = vmatprep.subr.bf16.mxu1 %v5798_v47  ;;  %v2670_v46 = vld [vmem:[%s7768_s7 + $0x120] sm:$0xff]  ;;  %v2667_v47 = vld [vmem:[%s7768_s7 + $0x108] sm:$0xff] }
 0x1f3   :  { %2555 = vmatpush1.bf16.msra.mxu0 %v5793_v48  ;;  %2596 = vmatpush1.bf16.msra.mxu1 %v5796_v50  ;;  %v2671_v48 = vld [vmem:[%s7768_s7 + $0x128] sm:$0xff]  ;;  %v5012_v50 = vcombine.low %v2658_v36, %v2662_v37 }
 0x1f4   :  { %2556 = vmatprep.subr.bf16.mxu0 %v5801_v51  ;;  %2597 = vmatprep.subr.bf16.mxu1 %v5804_v53  ;;  %v5014_v51 = vcombine.low %v2659_v38, %v2663_v39  ;;  %v5021_v53 = vcombine.high %v2666_v45, %v2670_v46  ;;  %v5022_v60 = vcombine.low %v2667_v47, %v2671_v48  ;;  %v2715_v36 = vld [vmem:[%s7768_s7 + $0x288] sm:$0xff] }
 0x1f5   :  { %v2719_v37 = vld [vmem:[%s7768_s7 + $0x2a8] sm:$0xff]  ;;  %v5062_v39 = vcombine.low %v2707_v14, %v2711_v31 }
 0x1f7   :  { %2557 = vmatpush1.bf16.msra.mxu0 %v5799_v54  ;;  %2598 = vmatpush1.bf16.msra.mxu1 %v5802_v55  ;;  %v5023_v54 = vcombine.high %v2667_v47, %v2671_v48  ;;  %v2674_v55 = vld [vmem:[%s7768_s7 + $0x140] sm:$0xff]  ;;  %v5070_v48 = vcombine.low %v2715_v36, %v2719_v37 }
 0x1f8   :  { %2558 = vmatprep.subr.bf16.mxu0 %v5807_v56  ;;  %2599 = vmatprep.subr.bf16.mxu1 %v5810_v57  ;;  %v2678_v56 = vld [vmem:[%s7768_s7 + $0x160] sm:$0xff]  ;;  %v2675_v57 = vld [vmem:[%s7768_s7 + $0x148] sm:$0xff] }
 0x1f9   :  { %v5029_v61 = vcombine.high %v2674_v55, %v2678_v56 }
 0x1fb   :  { %2559 = vmatpush1.bf16.msra.mxu0 %v5805_v58  ;;  %2600 = vmatpush1.bf16.msra.mxu1 %v5808_v59  ;;  %v2679_v58 = vld [vmem:[%s7768_s7 + $0x168] sm:$0xff]  ;;  %v5020_v59 = vcombine.low %v2666_v45, %v2670_v46 }
 0x1fc   :  { %4212 = vmatprep.subr.bf16.mxu0 %v4989_v5  ;;  %4294 = vmatprep.subr.bf16.mxu1 %v4991_v8  ;;  %v5031_v62 = vcombine.high %v2675_v57, %v2679_v58  ;;  %v2683_v5 = vld [vmem:[%s7768_s7 + $0x188] sm:$0xff]  ;;  %v5030_v8 = vcombine.low %v2675_v57, %v2679_v58 }
 0x1fd   :  { %v2723_v45 = vld [vmem:[%s7768_s7 + $0x2c8] sm:$0xff] }
 0x1fe   :  { %v2727_v46 = vld [vmem:[%s7768_s7 + $0x2e8] sm:$0xff] }
 0x1ff   :  { %v5078_v58 = vcombine.low %v2723_v45, %v2727_v46 }
 0x2b1   :  { %v5264_v9 = vpop.f32.mrb[4].mxu0  ;;  %v5286_v10 = vpop.f32.mrb[4].mxu1 }
 0x2b2   :  { %v5265_v12 = vpop.f32.mrb[5].mxu0  ;;  %v5287_v52 = vpop.f32.mrb[5].mxu1 }
 0x2b3   :  { %v5266_v15 = vadd.f32 %v5265_v12, %v5264_v9  ;;  %v5288_v16 = vadd.f32 %v5287_v52, %v5286_v10  ;;  %v5267_v17 = vpop.f32.mrb[6].mxu0  ;;  %v5289_v18 = vpop.f32.mrb[6].mxu1  ;;  %v5039_v10 = vcombine.high %v2683_v5, %v2687_v6  ;;  %v2694_v12 = vld [vmem:[%s7768_s7 + $0x1e0] sm:$0xff]  ;;  %v2691_v52 = vld [vmem:[%s7768_s7 + $0x1c8] sm:$0xff] }
 0x2b4   :  { %v5268_v19 = vpop.f32.mrb[7].mxu0  ;;  %v5290_v20 = vpop.f32.mrb[7].mxu1  ;;  %v5038_v17 = vcombine.low %v2683_v5, %v2687_v6 }
 0x2b5   :  { %v2284_v21 = vadd.f32 %v5266_v15, %v4923_v11  ;;  %v2690_v11 = vld [vmem:[%s7768_s7 + $0x1c0] sm:$0xff]  ;;  %v2695_v15 = vld [vmem:[%s7768_s7 + $0x1e8] sm:$0xff] }
 0x2b6   :  { %v5045_v18 = vcombine.high %v2690_v11, %v2694_v12  ;;  %v5047_v19 = vcombine.high %v2691_v52, %v2695_v15  ;;  %v2698_v20 = vld [vmem:[%s7768_s7 + $0x200] sm:$0xff]  ;;  %v5044_v24 = vcombine.low %v2690_v11, %v2694_v12  ;;  %v5046_v13 = vcombine.low %v2691_v52, %v2695_v15  ;;  %v2747_v52 = vld [vmem:[%s7768_s7 + $0x388] sm:$0xff] }
 0x2b7   :  { %v2324_v26 = vadd.f32 %v5288_v16, %v2284_v21  ;;  %v2702_v21 = vld [vmem:[%s7768_s7 + $0x220] sm:$0xff] }
 0x2b8   :  { %v5052_v32 = vcombine.low %v2698_v20, %v2702_v21  ;;  %v2746_v11 = vld [vmem:[%s7768_s7 + $0x380] sm:$0xff] }
 0x2b9   :  { %v2329_v28 = vpack.c.bf16 %v2324_v26, %v2324_v26  ;;  %v5053_v26 = vcombine.high %v2698_v20, %v2702_v21  ;;  %v2750_v12 = vld [vmem:[%s7768_s7 + $0x3a0] sm:$0xff] }
 0x2ba   :  { %v5101_v15 = vcombine.high %v2746_v11, %v2750_v12  ;;  %v2754_v20 = vld [vmem:[%s7768_s7 + $0x3c0] sm:$0xff] }
 0x2bb   :  { %2577 = vmatmul.mubr.bf16.vlgmr.msra.gmra.mrb[8].mxu0 %v2329_v28  ;;  %2618 = vmatmul.mubr.bf16.vlgmr.msra.gmra.mrb[8].mxu1 %v2329_v28  ;;  %v5055_v28 = vcombine.high %v2699_v22, %v2703_v23  ;;  %v2758_v21 = vld [vmem:[%s7768_s7 + $0x3e0] sm:$0xff]  ;;  %v2755_v22 = vld [vmem:[%s7768_s7 + $0x3c8] sm:$0xff] }
 0x2bc   :  { %4213 = vmatpush1.bf16.msra.mxu0 %v4988_v4  ;;  %4295 = vmatpush1.bf16.msra.mxu1 %v4990_v7  ;;  %v2686_v4 = vld [vmem:[%s7768_s7 + $0x1a0] sm:$0xff]  ;;  %v5028_v7 = vcombine.low %v2674_v55, %v2678_v56  ;;  %v2731_v55 = vld [vmem:[%s7768_s7 + $0x308] sm:$0xff]  ;;  %v5109_v23 = vcombine.high %v2754_v20, %v2758_v21 }
 0x2bd   :  { %4214 = vmatprep.subr.bf16.mxu0 %v4997_v29  ;;  %4296 = vmatprep.subr.bf16.mxu1 %v4999_v30  ;;  %v5037_v9 = vcombine.high %v2682_v1, %v2686_v4  ;;  %v5036_v16 = vcombine.low %v2682_v1, %v2686_v4  ;;  %v2706_v29 = vld [vmem:[%s7768_s7 + $0x240] sm:$0xff]  ;;  %v2735_v56 = vld [vmem:[%s7768_s7 + $0x328] sm:$0xff] }
 0x2be   :  { %v2710_v30 = vld [vmem:[%s7768_s7 + $0x260] sm:$0xff]  ;;  %v2739_v1 = vld [vmem:[%s7768_s7 + $0x348] sm:$0xff]  ;;  %v5086_v6 = vcombine.low %v2731_v55, %v2735_v56 }
 0x2bf   :  { %v5060_v38 = vcombine.low %v2706_v29, %v2710_v30  ;;  %v2743_v4 = vld [vmem:[%s7768_s7 + $0x368] sm:$0xff] }
 0x2c0   :  { %4215 = vmatpush1.bf16.msra.mxu0 %v4996_v33  ;;  %4297 = vmatpush1.bf16.msra.mxu1 %v4998_v25  ;;  %v5061_v33 = vcombine.high %v2706_v29, %v2710_v30  ;;  %v5063_v25 = vcombine.high %v2707_v14, %v2711_v31  ;;  %v2762_v29 = vld [vmem:[%s7768_s7 + $0x400] sm:$0xff]  ;;  %v2763_v14 = vld [vmem:[%s7768_s7 + $0x408] sm:$0xff] }
 0x2c1   :  { %4216 = vmatprep.subr.bf16.mxu0 %v5005_v34  ;;  %4298 = vmatprep.subr.bf16.mxu1 %v5007_v35  ;;  %v2714_v34 = vld [vmem:[%s7768_s7 + $0x280] sm:$0xff] }
 0x2c2   :  { %v2718_v35 = vld [vmem:[%s7768_s7 + $0x2a0] sm:$0xff] }
 0x2c3   :  { %v5068_v47 = vcombine.low %v2714_v34, %v2718_v35  ;;  %v2766_v30 = vld [vmem:[%s7768_s7 + $0x420] sm:$0xff] }
 0x2c4   :  { %4217 = vmatpush1.bf16.msra.mxu0 %v5004_v40  ;;  %4299 = vmatpush1.bf16.msra.mxu1 %v5006_v41  ;;  %v5069_v40 = vcombine.high %v2714_v34, %v2718_v35  ;;  %v5071_v41 = vcombine.high %v2715_v36, %v2719_v37  ;;  %v5117_v31 = vcombine.high %v2762_v29, %v2766_v30  ;;  %v7126_v34 = vld [vmem:[%s7770_s6] sm:$0xf] }
 0x2c5   :  { %4218 = vmatprep.subr.bf16.mxu0 %v5013_v43  ;;  %4300 = vmatprep.subr.bf16.mxu1 %v5015_v44  ;;  %v2722_v43 = vld [vmem:[%s7768_s7 + $0x2c0] sm:$0xff]  ;;  %v2367_v35 = vrot.slane %v7126_v34, %v6808_v63  ;;  %v2371_v36 = vrot.slane %v7126_v34, %v6817_v2  ;;  %v2379_v37 = vrot.slane %v7126_v34, %v6820_v3 }
 0x2c6   :  { %v2726_v44 = vld [vmem:[%s7768_s7 + $0x2e0] sm:$0xff] }
 0x2c7   :  { %v5076_v57 = vcombine.low %v2722_v43, %v2726_v44 }
 0x2c8   :  { %4219 = vmatpush1.bf16.msra.mxu0 %v5012_v50  ;;  %4301 = vmatpush1.bf16.msra.mxu1 %v5014_v51  ;;  %v5077_v50 = vcombine.high %v2722_v43, %v2726_v44  ;;  %v5079_v51 = vcombine.high %v2723_v45, %v2727_v46 }
 0x2c9   :  { %4220 = vmatprep.subr.bf16.mxu0 %v5021_v53  ;;  %4302 = vmatprep.subr.bf16.mxu1 %v5023_v54  ;;  %v2730_v53 = vld [vmem:[%s7768_s7 + $0x300] sm:$0xff] }
 0x2ca   :  { %v2734_v54 = vld [vmem:[%s7768_s7 + $0x320] sm:$0xff] }
 0x2cb   :  { %v5084_v5 = vcombine.low %v2730_v53, %v2734_v54 }
 0x2cc   :  { %4221 = vmatpush1.bf16.msra.mxu0 %v5020_v59  ;;  %4303 = vmatpush1.bf16.msra.mxu1 %v5022_v60  ;;  %v5085_v59 = vcombine.high %v2730_v53, %v2734_v54  ;;  %v5087_v60 = vcombine.high %v2731_v55, %v2735_v56  ;;  %v2770_v54 = vld [vmem:[%s7768_s7 + $0x440] sm:$0xff] }
 0x2cd   :  { %4222 = vmatprep.subr.bf16.mxu0 %v5029_v61  ;;  %4304 = vmatprep.subr.bf16.mxu1 %v5031_v62  ;;  %v2738_v61 = vld [vmem:[%s7768_s7 + $0x340] sm:$0xff] }
 0x2ce   :  { %v2742_v62 = vld [vmem:[%s7768_s7 + $0x360] sm:$0xff] }
 0x2cf   :  { %v2774_v56 = vld [vmem:[%s7768_s7 + $0x460] sm:$0xff] }
 0x2d0   :  { %4223 = vmatpush1.bf16.msra.mxu0 %v5028_v7  ;;  %4305 = vmatpush1.bf16.msra.mxu1 %v5030_v8  ;;  %v5093_v7 = vcombine.high %v2738_v61, %v2742_v62  ;;  %v5095_v8 = vcombine.high %v2739_v1, %v2743_v4 }
 0x2d1   :  { %4224 = vmatprep.subr.bf16.mxu0 %v5037_v9  ;;  %4306 = vmatprep.subr.bf16.mxu1 %v5039_v10  ;;  %v5092_v9 = vcombine.low %v2738_v61, %v2742_v62  ;;  %v5094_v10 = vcombine.low %v2739_v1, %v2743_v4  ;;  %v2778_v61 = vld [vmem:[%s7768_s7 + $0x480] sm:$0xff]  ;;  %v5125_v62 = vcombine.high %v2770_v54, %v2774_v56 }
 0x2d2   :  { %v2782_v4 = vld [vmem:[%s7768_s7 + $0x4a0] sm:$0xff] }
 0x2d4   :  { %4225 = vmatpush1.bf16.msra.mxu0 %v5036_v16  ;;  %4307 = vmatpush1.bf16.msra.mxu1 %v5038_v17  ;;  %v2751_v16 = vld [vmem:[%s7768_s7 + $0x3a8] sm:$0xff]  ;;  %v5100_v17 = vcombine.low %v2746_v11, %v2750_v12  ;;  %v2786_v12 = vld [vmem:[%s7768_s7 + $0x4c0] sm:$0xff] }
 0x2d5   :  { %4226 = vmatprep.subr.bf16.mxu0 %v5045_v18  ;;  %4308 = vmatprep.subr.bf16.mxu1 %v5047_v19  ;;  %v5102_v18 = vcombine.low %v2747_v52, %v2751_v16  ;;  %v5103_v19 = vcombine.high %v2747_v52, %v2751_v16  ;;  %v2790_v52 = vld [vmem:[%s7768_s7 + $0x4e0] sm:$0xff]  ;;  %v2791_v16 = vld [vmem:[%s7768_s7 + $0x4e8] sm:$0xff] }
 0x2d8   :  { %4227 = vmatpush1.bf16.msra.mxu0 %v5044_v24  ;;  %4309 = vmatpush1.bf16.msra.mxu1 %v5046_v13  ;;  %v2759_v24 = vld [vmem:[%s7768_s7 + $0x3e8] sm:$0xff]  ;;  %v5108_v13 = vcombine.low %v2754_v20, %v2758_v21  ;;  %v2794_v21 = vld [vmem:[%s7768_s7 + $0x500] sm:$0xff] }
 0x2d9   :  { %4228 = vmatprep.subr.bf16.mxu0 %v5053_v26  ;;  %4310 = vmatprep.subr.bf16.mxu1 %v5055_v28  ;;  %v5110_v26 = vcombine.low %v2755_v22, %v2759_v24  ;;  %v5111_v28 = vcombine.high %v2755_v22, %v2759_v24  ;;  %v2798_v22 = vld [vmem:[%s7768_s7 + $0x520] sm:$0xff]  ;;  %v2799_v24 = vld [vmem:[%s7768_s7 + $0x528] sm:$0xff] }
 0x2dc   :  { %4229 = vmatpush1.bf16.msra.mxu0 %v5052_v32  ;;  %4311 = vmatpush1.bf16.msra.mxu1 %v5054_v27  ;;  %v2767_v32 = vld [vmem:[%s7768_s7 + $0x428] sm:$0xff]  ;;  %v5116_v27 = vcombine.low %v2762_v29, %v2766_v30  ;;  %v2802_v30 = vld [vmem:[%s7768_s7 + $0x540] sm:$0xff] }
 0x2dd   :  { %4230 = vmatprep.subr.bf16.mxu0 %v5061_v33  ;;  %4312 = vmatprep.subr.bf16.mxu1 %v5063_v25  ;;  %v5118_v33 = vcombine.low %v2763_v14, %v2767_v32  ;;  %v5119_v25 = vcombine.high %v2763_v14, %v2767_v32  ;;  %v2806_v14 = vld [vmem:[%s7768_s7 + $0x560] sm:$0xff]  ;;  %v2807_v32 = vld [vmem:[%s7768_s7 + $0x568] sm:$0xff] }
 0x2e0   :  { %4231 = vmatpush1.bf16.msra.mxu0 %v5060_v38  ;;  %4313 = vmatpush1.bf16.msra.mxu1 %v5062_v39 }
 0x2e1   :  { %4232 = vmatprep.subr.bf16.mxu0 %v5069_v40  ;;  %4314 = vmatprep.subr.bf16.mxu1 %v5071_v41 }
 0x2e4   :  { %4233 = vmatpush1.bf16.msra.mxu0 %v5068_v47  ;;  %4315 = vmatpush1.bf16.msra.mxu1 %v5070_v48 }
 0x2e5   :  { %4234 = vmatprep.subr.bf16.mxu0 %v5077_v50  ;;  %4316 = vmatprep.subr.bf16.mxu1 %v5079_v51 }
 0x2e8   :  { %4235 = vmatpush1.bf16.msra.mxu0 %v5076_v57  ;;  %4317 = vmatpush1.bf16.msra.mxu1 %v5078_v58  ;;  %v2771_v57 = vld [vmem:[%s7768_s7 + $0x448] sm:$0xff] }
 0x2e9   :  { %4236 = vmatprep.subr.bf16.mxu0 %v5085_v59  ;;  %4318 = vmatprep.subr.bf16.mxu1 %v5087_v60  ;;  %v2775_v58 = vld [vmem:[%s7768_s7 + $0x468] sm:$0xff] }
 0x2ea   :  { %v5127_v1 = vcombine.high %v2771_v57, %v2775_v58 }
 0x2ec   :  { %4237 = vmatpush1.bf16.msra.mxu0 %v5084_v5  ;;  %4319 = vmatpush1.bf16.msra.mxu1 %v5086_v6  ;;  %v2779_v5 = vld [vmem:[%s7768_s7 + $0x488] sm:$0xff] }
 0x2ed   :  { %4238 = vmatprep.subr.bf16.mxu0 %v5093_v7  ;;  %4320 = vmatprep.subr.bf16.mxu1 %v5095_v8  ;;  %v2783_v6 = vld [vmem:[%s7768_s7 + $0x4a8] sm:$0xff]  ;;  %v5124_v8 = vcombine.low %v2770_v54, %v2774_v56  ;;  %v2826_v56 = vld [vmem:[%s7768_s7 + $0x600] sm:$0xff] }
 0x2ee   :  { %v5135_v11 = vcombine.high %v2779_v5, %v2783_v6 }
 0x2f0   :  { %4239 = vmatpush1.bf16.msra.mxu0 %v5092_v9  ;;  %4321 = vmatpush1.bf16.msra.mxu1 %v5094_v10  ;;  %v5126_v9 = vcombine.low %v2771_v57, %v2775_v58  ;;  %v5133_v10 = vcombine.high %v2778_v61, %v2782_v4  ;;  %v2830_v57 = vld [vmem:[%s7768_s7 + $0x620] sm:$0xff]  ;;  %v2827_v58 = vld [vmem:[%s7768_s7 + $0x608] sm:$0xff] }
 0x2f1   :  { %4240 = vmatprep.subr.bf16.mxu0 %v5101_v15  ;;  %4322 = vmatprep.subr.bf16.mxu1 %v5103_v19  ;;  %v2787_v15 = vld [vmem:[%s7768_s7 + $0x4c8] sm:$0xff]  ;;  %v5141_v19 = vcombine.high %v2786_v12, %v2790_v52 }
 0x2f2   :  { %v5143_v20 = vcombine.high %v2787_v15, %v2791_v16 }
 0x2f4   :  { %4241 = vmatpush1.bf16.msra.mxu0 %v5100_v17  ;;  %4323 = vmatpush1.bf16.msra.mxu1 %v5102_v18  ;;  %v5132_v17 = vcombine.low %v2778_v61, %v2782_v4  ;;  %v5134_v18 = vcombine.low %v2779_v5, %v2783_v6  ;;  %v2831_v61 = vld [vmem:[%s7768_s7 + $0x628] sm:$0xff]  ;;  %v5181_v4 = vcombine.high %v2826_v56, %v2830_v57  ;;  %v2834_v6 = vld [vmem:[%s7768_s7 + $0x640] sm:$0xff] }
 0x2f5   :  { %4242 = vmatprep.subr.bf16.mxu0 %v5109_v23  ;;  %4324 = vmatprep.subr.bf16.mxu1 %v5111_v28  ;;  %v2795_v23 = vld [vmem:[%s7768_s7 + $0x508] sm:$0xff]  ;;  %v5149_v28 = vcombine.high %v2794_v21, %v2798_v22  ;;  %v5183_v5 = vcombine.high %v2827_v58, %v2831_v61 }
 0x2f6   :  { %v5151_v29 = vcombine.high %v2795_v23, %v2799_v24 }
 0x2f8   :  { %4243 = vmatpush1.bf16.msra.mxu0 %v5108_v13  ;;  %4325 = vmatpush1.bf16.msra.mxu1 %v5110_v26  ;;  %v5140_v13 = vcombine.low %v2786_v12, %v2790_v52  ;;  %v5142_v26 = vcombine.low %v2787_v15, %v2791_v16  ;;  %v5182_v12 = vcombine.low %v2827_v58, %v2831_v61  ;;  %v2842_v16 = vld [vmem:[%s7768_s7 + $0x680] sm:$0xff] }
 0x2f9   :  { %4253 = vmatprep.subr.bf16.mxu0 %v5117_v31  ;;  %4335 = vmatprep.subr.bf16.mxu1 %v5119_v25  ;;  %v2803_v31 = vld [vmem:[%s7768_s7 + $0x548] sm:$0xff]  ;;  %v5157_v25 = vcombine.high %v2802_v30, %v2806_v14 }
 0x38e   :  { %v2578_v38 = vpop.f32.mrb[8].mxu0  ;;  %v7134_v39 = vpop.f32.mrb[8].mxu1 }
 0x38f   :  { %v2579_v40 = vadd.f32 %v2578_v38, %v2367_v35  ;;  %v2580_v41 = vpop.f32.mrb[9].mxu0  ;;  %v2621_v43 = vpop.f32.mrb[9].mxu1  ;;  %v5159_v35 = vcombine.high %v2803_v31, %v2807_v32  ;;  %v2811_v38 = vld [vmem:[%s7768_s7 + $0x588] sm:$0xff] }
 0x390   :  { %v2581_v44 = vadd.f32 %v2580_v41, %v2371_v36  ;;  %v2622_v45 = vadd.f32 %v2621_v43, %v2379_v37  ;;  %v2582_v46 = vpop.f32.mrb[10].mxu0  ;;  %v2623_v47 = vpop.f32.mrb[10].mxu1  ;;  %v2810_v36 = vld [vmem:[%s7768_s7 + $0x580] sm:$0xff]  ;;  %v5156_v41 = vcombine.low %v2802_v30, %v2806_v14  ;;  %v5158_v43 = vcombine.low %v2803_v31, %v2807_v32 }
 0x391   :  { %v2626_v48 = vmax.f32 %v2579_v40, 0.0  ;;  %v2583_v50 = vpop.f32.mrb[11].mxu0  ;;  %v2624_v51 = vpop.f32.mrb[11].mxu1  ;;  %v2814_v37 = vld [vmem:[%s7768_s7 + $0x5a0] sm:$0xff]  ;;  %v2815_v40 = vld [vmem:[%s7768_s7 + $0x5a8] sm:$0xff] }
 0x392   :  { %v2627_v53 = vmax.f32 %v2581_v44, 0.0  ;;  %v2629_v55 = vmax.f32 %v2622_v45, 0.0  ;;  %v5165_v44 = vcombine.high %v2810_v36, %v2814_v37  ;;  %v5167_v45 = vcombine.high %v2811_v38, %v2815_v40  ;;  %v2818_v46 = vld [vmem:[%s7768_s7 + $0x5c0] sm:$0xff]  ;;  %v2823_v50 = vld [vmem:[%s7768_s7 + $0x5e8] sm:$0xff] }
 0x393   :  { %v7150_v60 = vpack.c.bf16 %v2626_v48, %v2626_v48  ;;  %v2822_v47 = vld [vmem:[%s7768_s7 + $0x5e0] sm:$0xff]  ;;  %v2819_v48 = vld [vmem:[%s7768_s7 + $0x5c8] sm:$0xff]  ;;  %v5164_v51 = vcombine.low %v2810_v36, %v2814_v37 }
 0x394   :  { %v7148_v59 = vpack.c.bf16 %v2627_v53, %v2627_v53  ;;  %v7166_v7 = vpack.c.bf16 %v2629_v55, %v2629_v55  ;;  %v5166_v53 = vcombine.low %v2811_v38, %v2815_v40  ;;  %v5173_v54 = vcombine.high %v2818_v46, %v2822_v47  ;;  %v2858_v32 = vld [vmem:[%s7768_s7 + $0x700] sm:$0xff] }
 0x395   :  { %v5175_v55 = vcombine.high %v2819_v48, %v2823_v50  ;;  %v2866_v40 = vld [vmem:[%s7768_s7 + $0x740] sm:$0xff] }
 0x396   :  { %4244 = vmatprep.mubr.bf16.mxu0 %v7148_v59  ;;  %4326 = vmatprep.mubr.bf16.mxu1 %v7148_v59 }
 0x397   :  { %4245 = vmatmul.mubr.bf16.vlgmr.msra.gmra.mrb[12].mxu0 %v7150_v60  ;;  %4327 = vmatmul.mubr.bf16.vlgmr.msra.gmra.mrb[12].mxu1 %v7150_v60 }
 0x398   :  { %4254 = vmatpush1.bf16.msra.mxu0 %v5116_v27  ;;  %4336 = vmatpush1.bf16.msra.mxu1 %v5118_v33  ;;  %v5148_v27 = vcombine.low %v2794_v21, %v2798_v22  ;;  %v5150_v33 = vcombine.low %v2795_v23, %v2799_v24  ;;  %v2850_v24 = vld [vmem:[%s7768_s7 + $0x6c0] sm:$0xff] }
 0x399   :  { %4285 = vmatprep.mubr.bf16.mxu0 %v7166_v7  ;;  %4367 = vmatprep.mubr.bf16.mxu1 %v7166_v7 }
 0x39a   :  { %4255 = vmatprep.subr.bf16.mxu0 %v5125_v62  ;;  %4337 = vmatprep.subr.bf16.mxu1 %v5127_v1  ;;  %v5172_v62 = vcombine.low %v2818_v46, %v2822_v47  ;;  %v5174_v1 = vcombine.low %v2819_v48, %v2823_v50  ;;  %v2874_v50 = vld [vmem:[%s7768_s7 + $0x780] sm:$0xff] }
 0x39c   :  { %4256 = vmatpush1.bf16.msra.mxu0 %v5124_v8  ;;  %4338 = vmatpush1.bf16.msra.mxu1 %v5126_v9  ;;  %v2838_v8 = vld [vmem:[%s7768_s7 + $0x660] sm:$0xff]  ;;  %v2835_v9 = vld [vmem:[%s7768_s7 + $0x648] sm:$0xff] }
 0x39d   :  { %4257 = vmatprep.subr.bf16.mxu0 %v5133_v10  ;;  %4339 = vmatprep.subr.bf16.mxu1 %v5135_v11  ;;  %v2839_v10 = vld [vmem:[%s7768_s7 + $0x668] sm:$0xff]  ;;  %v5180_v11 = vcombine.low %v2826_v56, %v2830_v57  ;;  %v5189_v52 = vcombine.high %v2834_v6, %v2838_v8  ;;  %v2375_v57 = vrot.slane %v7126_v34, %v6811_v0 }
 0x39e   :  { %v5191_v15 = vcombine.high %v2835_v9, %v2839_v10  ;;  %v5190_v21 = vcombine.low %v2835_v9, %v2839_v10  ;;  %v2887_v34 = vld [vmem:[%s7768_s7 + $0x7e8] sm:$0xff] }
 0x3a0   :  { %4258 = vmatpush1.bf16.msra.mxu0 %v5132_v17  ;;  %4340 = vmatpush1.bf16.msra.mxu1 %v5134_v18  ;;  %v2846_v17 = vld [vmem:[%s7768_s7 + $0x6a0] sm:$0xff]  ;;  %v2843_v18 = vld [vmem:[%s7768_s7 + $0x688] sm:$0xff] }
 0x3a1   :  { %4259 = vmatprep.subr.bf16.mxu0 %v5141_v19  ;;  %4341 = vmatprep.subr.bf16.mxu1 %v5143_v20  ;;  %v2847_v19 = vld [vmem:[%s7768_s7 + $0x6a8] sm:$0xff]  ;;  %v5188_v20 = vcombine.low %v2834_v6, %v2838_v8  ;;  %v5197_v22 = vcombine.high %v2842_v16, %v2846_v17  ;;  %v2620_v8 = vadd.f32 %v7134_v39, %v2375_v57  ;;  %v2641_v39 = vld [vmem:[%s7768_s7 + $0x38] sm:$0xff] }
 0x3a2   :  { %v5199_v23 = vcombine.high %v2843_v18, %v2847_v19  ;;  %v5198_v30 = vcombine.low %v2843_v18, %v2847_v19  ;;  %v2677_v57 = vld [vmem:[%s7768_s7 + $0x158] sm:$0xff] }
 0x3a4   :  { %4260 = vmatpush1.bf16.msra.mxu0 %v5140_v13  ;;  %4342 = vmatpush1.bf16.msra.mxu1 %v5142_v26  ;;  %v2854_v13 = vld [vmem:[%s7768_s7 + $0x6e0] sm:$0xff]  ;;  %v2851_v26 = vld [vmem:[%s7768_s7 + $0x6c8] sm:$0xff] }
 0x3a5   :  { %4261 = vmatprep.subr.bf16.mxu0 %v5149_v28  ;;  %4343 = vmatprep.subr.bf16.mxu1 %v5151_v29  ;;  %v2855_v28 = vld [vmem:[%s7768_s7 + $0x6e8] sm:$0xff]  ;;  %v5196_v29 = vcombine.low %v2842_v16, %v2846_v17  ;;  %v5205_v14 = vcombine.high %v2850_v24, %v2854_v13  ;;  %v2628_v17 = vmax.f32 %v2620_v8, 0.0  ;;  %v2689_v8 = vld [vmem:[%s7768_s7 + $0x1b8] sm:$0xff] }
 0x3a6   :  { %v5207_v31 = vcombine.high %v2851_v26, %v2855_v28  ;;  %v5206_v36 = vcombine.low %v2851_v26, %v2855_v28 }
 0x3a8   :  { %4262 = vmatpush1.bf16.msra.mxu0 %v5148_v27  ;;  %4344 = vmatpush1.bf16.msra.mxu1 %v5150_v33  ;;  %v2862_v27 = vld [vmem:[%s7768_s7 + $0x720] sm:$0xff]  ;;  %v2859_v33 = vld [vmem:[%s7768_s7 + $0x708] sm:$0xff] }
 0x3a9   :  { %4263 = vmatprep.subr.bf16.mxu0 %v5157_v25  ;;  %4345 = vmatprep.subr.bf16.mxu1 %v5159_v35  ;;  %v2863_v25 = vld [vmem:[%s7768_s7 + $0x728] sm:$0xff]  ;;  %v5204_v35 = vcombine.low %v2850_v24, %v2854_v13  ;;  %v5213_v37 = vcombine.high %v2858_v32, %v2862_v27  ;;  %v7355_v13 = vpack.c.bf16 %v2628_v17, %v2628_v17 }
 0x3aa   :  { %v5215_v38 = vcombine.high %v2859_v33, %v2863_v25  ;;  %v5214_v46 = vcombine.low %v2859_v33, %v2863_v25 }
 0x3ac   :  { %4264 = vmatpush1.bf16.msra.mxu0 %v5156_v41  ;;  %4346 = vmatpush1.bf16.msra.mxu1 %v5158_v43  ;;  %v2870_v41 = vld [vmem:[%s7768_s7 + $0x760] sm:$0xff]  ;;  %v2867_v43 = vld [vmem:[%s7768_s7 + $0x748] sm:$0xff] }
 0x3ad   :  { %4265 = vmatprep.subr.bf16.mxu0 %v5165_v44  ;;  %4347 = vmatprep.subr.bf16.mxu1 %v5167_v45  ;;  %v2871_v44 = vld [vmem:[%s7768_s7 + $0x768] sm:$0xff]  ;;  %v5212_v45 = vcombine.low %v2858_v32, %v2862_v27  ;;  %v5221_v47 = vcombine.high %v2866_v40, %v2870_v41  ;;  %v2657_v32 = vld [vmem:[%s7768_s7 + $0xb8] sm:$0xff] }
 0x3ae   :  { %v5223_v48 = vcombine.high %v2867_v43, %v2871_v44  ;;  %v5222_v56 = vcombine.low %v2867_v43, %v2871_v44 }
 0x3b0   :  { %4266 = vmatpush1.bf16.msra.mxu0 %v5164_v51  ;;  %4348 = vmatpush1.bf16.msra.mxu1 %v5166_v53  ;;  %v2878_v51 = vld [vmem:[%s7768_s7 + $0x7a0] sm:$0xff]  ;;  %v2875_v53 = vld [vmem:[%s7768_s7 + $0x788] sm:$0xff] }
 0x3b1   :  { %4267 = vmatprep.subr.bf16.mxu0 %v5173_v54  ;;  %4349 = vmatprep.subr.bf16.mxu1 %v5175_v55  ;;  %v2879_v54 = vld [vmem:[%s7768_s7 + $0x7a8] sm:$0xff]  ;;  %v5220_v55 = vcombine.low %v2866_v40, %v2870_v41  ;;  %v5229_v58 = vcombine.high %v2874_v50, %v2878_v51 }
 0x3b2   :  { %v5231_v61 = vcombine.high %v2875_v53, %v2879_v54  ;;  %v5230_v6 = vcombine.low %v2875_v53, %v2879_v54 }
 0x3b4   :  { %4268 = vmatpush1.bf16.msra.mxu0 %v5172_v62  ;;  %4350 = vmatpush1.bf16.msra.mxu1 %v5174_v1  ;;  %v2882_v62 = vld [vmem:[%s7768_s7 + $0x7c0] sm:$0xff] }
 0x3b5   :  { %4269 = vmatprep.subr.bf16.mxu0 %v5181_v4  ;;  %4351 = vmatprep.subr.bf16.mxu1 %v5183_v5  ;;  %v2886_v1 = vld [vmem:[%s7768_s7 + $0x7e0] sm:$0xff]  ;;  %v2883_v4 = vld [vmem:[%s7768_s7 + $0x7c8] sm:$0xff]  ;;  %v5228_v5 = vcombine.low %v2874_v50, %v2878_v51 }
 0x3b6   :  { %v5237_v9 = vcombine.high %v2882_v62, %v2886_v1  ;;  %v5239_v10 = vcombine.high %v2883_v4, %v2887_v34  ;;  %v5238_v16 = vcombine.low %v2883_v4, %v2887_v34  ;;  %v2684_v34 = vld [vmem:[%s7768_s7 + $0x190] sm:$0xff] }
 0x3b8   :  { %4270 = vmatpush1.bf16.msra.mxu0 %v5180_v11  ;;  %4352 = vmatpush1.bf16.msra.mxu1 %v5182_v12  ;;  %v2636_v11 = vld [vmem:[%s7768_s7 + $0x10] sm:$0xff] }
 0x3b9   :  { %4271 = vmatprep.subr.bf16.mxu0 %v5189_v52  ;;  %4353 = vmatprep.subr.bf16.mxu1 %v5191_v15  ;;  %v2640_v12 = vld [vmem:[%s7768_s7 + $0x30] sm:$0xff]  ;;  %v2637_v52 = vld [vmem:[%s7768_s7 + $0x18] sm:$0xff]  ;;  %v5236_v15 = vcombine.low %v2882_v62, %v2886_v1 }
 0x3ba   :  { %v4993_v18 = vcombine.high %v2636_v11, %v2640_v12  ;;  %v4995_v19 = vcombine.high %v2637_v52, %v2641_v39  ;;  %v4992_v24 = vcombine.low %v2636_v11, %v2640_v12  ;;  %v4994_v26 = vcombine.low %v2637_v52, %v2641_v39  ;;  %v2692_v52 = vld [vmem:[%s7768_s7 + $0x1d0] sm:$0xff] }
 0x3bb   :  { %v2696_v39 = vld [vmem:[%s7768_s7 + $0x1f0] sm:$0xff] }
 0x3bc   :  { %4272 = vmatpush1.bf16.msra.mxu0 %v5188_v20  ;;  %4354 = vmatpush1.bf16.msra.mxu1 %v5190_v21  ;;  %v2644_v20 = vld [vmem:[%s7768_s7 + $0x50] sm:$0xff] }
 0x3bd   :  { %4273 = vmatprep.subr.bf16.mxu0 %v5197_v22  ;;  %4355 = vmatprep.subr.bf16.mxu1 %v5199_v23  ;;  %v2648_v21 = vld [vmem:[%s7768_s7 + $0x70] sm:$0xff]  ;;  %v2645_v22 = vld [vmem:[%s7768_s7 + $0x58] sm:$0xff] }
 0x3be   :  { %v2649_v23 = vld [vmem:[%s7768_s7 + $0x78] sm:$0xff]  ;;  %v5001_v28 = vcombine.high %v2644_v20, %v2648_v21  ;;  %v5000_v27 = vcombine.low %v2644_v20, %v2648_v21  ;;  %v2700_v21 = vld [vmem:[%s7768_s7 + $0x210] sm:$0xff] }
 0x3bf   :  { %v5002_v33 = vcombine.low %v2645_v22, %v2649_v23 }
 0x3c0   :  { %4274 = vmatpush1.bf16.msra.mxu0 %v5196_v29  ;;  %4356 = vmatpush1.bf16.msra.mxu1 %v5198_v30  ;;  %v5003_v29 = vcombine.high %v2645_v22, %v2649_v23  ;;  %v2652_v30 = vld [vmem:[%s7768_s7 + $0x90] sm:$0xff]  ;;  %v2701_v23 = vld [vmem:[%s7768_s7 + $0x218] sm:$0xff] }
 0x3c1   :  { %4275 = vmatprep.subr.bf16.mxu0 %v5205_v14  ;;  %4357 = vmatprep.subr.bf16.mxu1 %v5207_v31  ;;  %v2656_v14 = vld [vmem:[%s7768_s7 + $0xb0] sm:$0xff]  ;;  %v2653_v31 = vld [vmem:[%s7768_s7 + $0x98] sm:$0xff] }
 0x3c2   :  { %v5009_v25 = vcombine.high %v2652_v30, %v2656_v14  ;;  %v5008_v40 = vcombine.low %v2652_v30, %v2656_v14  ;;  %v5010_v41 = vcombine.low %v2653_v31, %v2657_v32  ;;  %v2704_v22 = vld [vmem:[%s7768_s7 + $0x230] sm:$0xff] }
 0x3c3   :  { %v2708_v14 = vld [vmem:[%s7768_s7 + $0x250] sm:$0xff] }
 0x3c4   :  { %4276 = vmatpush1.bf16.msra.mxu0 %v5204_v35  ;;  %4358 = vmatpush1.bf16.msra.mxu1 %v5206_v36  ;;  %v5011_v35 = vcombine.high %v2653_v31, %v2657_v32  ;;  %v2660_v36 = vld [vmem:[%s7768_s7 + $0xd0] sm:$0xff]  ;;  %v2709_v32 = vld [vmem:[%s7768_s7 + $0x258] sm:$0xff] }
 0x3c5   :  { %4277 = vmatprep.subr.bf16.mxu0 %v5213_v37  ;;  %4359 = vmatprep.subr.bf16.mxu1 %v5215_v38  ;;  %v2664_v37 = vld [vmem:[%s7768_s7 + $0xf0] sm:$0xff]  ;;  %v2661_v38 = vld [vmem:[%s7768_s7 + $0xd8] sm:$0xff] }
 0x3c6   :  { %v5017_v43 = vcombine.high %v2660_v36, %v2664_v37  ;;  %v5016_v50 = vcombine.low %v2660_v36, %v2664_v37  ;;  %v2712_v31 = vld [vmem:[%s7768_s7 + $0x270] sm:$0xff] }
 0x3c7   :  { %v2716_v37 = vld [vmem:[%s7768_s7 + $0x290] sm:$0xff] }
 0x3c8   :  { %4278 = vmatpush1.bf16.msra.mxu0 %v5212_v45  ;;  %4360 = vmatpush1.bf16.msra.mxu1 %v5214_v46  ;;  %v2668_v45 = vld [vmem:[%s7768_s7 + $0x110] sm:$0xff] }
 0x3c9   :  { %4279 = vmatprep.subr.bf16.mxu0 %v5221_v47  ;;  %4361 = vmatprep.subr.bf16.mxu1 %v5223_v48  ;;  %v2672_v46 = vld [vmem:[%s7768_s7 + $0x130] sm:$0xff]  ;;  %v2669_v47 = vld [vmem:[%s7768_s7 + $0x118] sm:$0xff] }
 0x3ca   :  { %v2673_v48 = vld [vmem:[%s7768_s7 + $0x138] sm:$0xff]  ;;  %v5025_v53 = vcombine.high %v2668_v45, %v2672_v46 }
 0x3cb   :  { %v5027_v54 = vcombine.high %v2669_v47, %v2673_v48  ;;  %v5026_v62 = vcombine.low %v2669_v47, %v2673_v48  ;;  %v2728_v47 = vld [vmem:[%s7768_s7 + $0x2f0] sm:$0xff]  ;;  %v2725_v48 = vld [vmem:[%s7768_s7 + $0x2d8] sm:$0xff] }
 0x3cc   :  { %4280 = vmatpush1.bf16.msra.mxu0 %v5220_v55  ;;  %4362 = vmatpush1.bf16.msra.mxu1 %v5222_v56  ;;  %v2676_v55 = vld [vmem:[%s7768_s7 + $0x150] sm:$0xff] }
 0x3cd   :  { %4281 = vmatprep.subr.bf16.mxu0 %v5229_v58  ;;  %4363 = vmatprep.subr.bf16.mxu1 %v5231_v61  ;;  %v2680_v56 = vld [vmem:[%s7768_s7 + $0x170] sm:$0xff]  ;;  %v2681_v58 = vld [vmem:[%s7768_s7 + $0x178] sm:$0xff]  ;;  %v5024_v61 = vcombine.low %v2668_v45, %v2672_v46 }
 0x3ce   :  { %v5033_v1 = vcombine.high %v2676_v55, %v2680_v56  ;;  %v5035_v4 = vcombine.high %v2677_v57, %v2681_v58  ;;  %v2724_v46 = vld [vmem:[%s7768_s7 + $0x2d0] sm:$0xff] }
 0x3d0   :  { %4282 = vmatpush1.bf16.msra.mxu0 %v5228_v5  ;;  %4364 = vmatpush1.bf16.msra.mxu1 %v5230_v6  ;;  %v2688_v5 = vld [vmem:[%s7768_s7 + $0x1b0] sm:$0xff]  ;;  %v2685_v6 = vld [vmem:[%s7768_s7 + $0x198] sm:$0xff] }
 0x3d1   :  { %4283 = vmatprep.subr.bf16.mxu0 %v5237_v9  ;;  %4365 = vmatprep.subr.bf16.mxu1 %v5239_v10  ;;  %v5032_v9 = vcombine.low %v2676_v55, %v2680_v56  ;;  %v5034_v10 = vcombine.low %v2677_v57, %v2681_v58  ;;  %v5041_v11 = vcombine.high %v2684_v34, %v2688_v5  ;;  %v2732_v56 = vld [vmem:[%s7768_s7 + $0x310] sm:$0xff]  ;;  %v2733_v58 = vld [vmem:[%s7768_s7 + $0x318] sm:$0xff] }
 0x3d2   :  { %v5043_v12 = vcombine.high %v2685_v6, %v2689_v8  ;;  %v5040_v17 = vcombine.low %v2684_v34, %v2688_v5  ;;  %v2736_v57 = vld [vmem:[%s7768_s7 + $0x330] sm:$0xff] }
 0x3d3   :  { %v2740_v5 = vld [vmem:[%s7768_s7 + $0x350] sm:$0xff] }
 0x3d4   :  { %4284 = vmatpush1.bf16.msra.mxu0 %v5236_v15  ;;  %4366 = vmatpush1.bf16.msra.mxu1 %v5238_v16  ;;  %v2693_v15 = vld [vmem:[%s7768_s7 + $0x1d8] sm:$0xff] }
 0x3d5   :  { %4376 = vmatprep.subr.bf16.mxu0 %v4993_v18  ;;  %4458 = vmatprep.subr.bf16.mxu1 %v4995_v19  ;;  %v2697_v16 = vld [vmem:[%s7768_s7 + $0x1f8] sm:$0xff]  ;;  %v5042_v18 = vcombine.low %v2685_v6, %v2689_v8  ;;  %v5049_v19 = vcombine.high %v2692_v52, %v2696_v39  ;;  %v2744_v6 = vld [vmem:[%s7768_s7 + $0x370] sm:$0xff] }
 0x3d6   :  { %v5051_v20 = vcombine.high %v2693_v15, %v2697_v16  ;;  %v2741_v8 = vld [vmem:[%s7768_s7 + $0x358] sm:$0xff] }
 0x3d7   :  { %4286 = vmatmul.mubr.bf16.vlgmr.msra.gmra.mrb[12].mxu0 %v7355_v13  ;;  %4368 = vmatmul.mubr.bf16.vlgmr.msra.gmra.mrb[12].mxu1 %v7355_v13 }
 0x3d8   :  { %4377 = vmatpush1.bf16.msra.mxu0 %v4992_v24  ;;  %4408 = vmatprep.mubr.bf16.mxu0 %v7148_v59  ;;  %v2705_v24 = vld [vmem:[%s7768_s7 + $0x238] sm:$0xff] }
 0x3d9   :  { %4459 = vmatpush1.bf16.msra.mxu1 %v4994_v26  ;;  %4490 = vmatprep.mubr.bf16.mxu1 %v7148_v59  ;;  %v2665_v59 = vld [vmem:[%s7768_s7 + $0xf8] sm:$0xff]  ;;  %v5048_v26 = vcombine.low %v2692_v52, %v2696_v39  ;;  %v5059_v30 = vcombine.high %v2701_v23, %v2705_v24  ;;  %v2748_v39 = vld [vmem:[%s7768_s7 + $0x390] sm:$0xff] }
 0x3da   :  { %4378 = vmatprep.subr.bf16.mxu0 %v5001_v28  ;;  %4460 = vmatprep.subr.bf16.mxu1 %v5003_v29  ;;  %v5019_v44 = vcombine.high %v2661_v38, %v2665_v59  ;;  %v5018_v51 = vcombine.low %v2661_v38, %v2665_v59  ;;  %v5050_v28 = vcombine.low %v2693_v15, %v2697_v16  ;;  %v2720_v38 = vld [vmem:[%s7768_s7 + $0x2b0] sm:$0xff]  ;;  %v2717_v59 = vld [vmem:[%s7768_s7 + $0x298] sm:$0xff] }
 0x3db   :  { %v5057_v29 = vcombine.high %v2700_v21, %v2704_v22  ;;  %v2752_v15 = vld [vmem:[%s7768_s7 + $0x3b0] sm:$0xff]  ;;  %v2749_v16 = vld [vmem:[%s7768_s7 + $0x398] sm:$0xff] }
 0x3dc   :  { %4379 = vmatpush1.bf16.msra.mxu0 %v5000_v27  ;;  %v2713_v27 = vld [vmem:[%s7768_s7 + $0x278] sm:$0xff] }
 0x3dd   :  { %4461 = vmatpush1.bf16.msra.mxu1 %v5002_v33  ;;  %4380 = vmatprep.subr.bf16.mxu0 %v5009_v25  ;;  %v5056_v33 = vcombine.low %v2700_v21, %v2704_v22  ;;  %v5058_v25 = vcombine.low %v2701_v23, %v2705_v24  ;;  %v5067_v36 = vcombine.high %v2709_v32, %v2713_v27  ;;  %v2756_v22 = vld [vmem:[%s7768_s7 + $0x3d0] sm:$0xff]  ;;  %v2757_v24 = vld [vmem:[%s7768_s7 + $0x3d8] sm:$0xff] }
 0x3de   :  { %4462 = vmatprep.subr.bf16.mxu1 %v5011_v35  ;;  %v5065_v35 = vcombine.high %v2708_v14, %v2712_v31  ;;  %v2760_v23 = vld [vmem:[%s7768_s7 + $0x3f0] sm:$0xff] }
 0x3e0   :  { %4381 = vmatpush1.bf16.msra.mxu0 %v5008_v40  ;;  %v2721_v40 = vld [vmem:[%s7768_s7 + $0x2b8] sm:$0xff] }
 0x3e1   :  { %4463 = vmatpush1.bf16.msra.mxu1 %v5010_v41  ;;  %4382 = vmatprep.subr.bf16.mxu0 %v5017_v43  ;;  %v5064_v41 = vcombine.low %v2708_v14, %v2712_v31  ;;  %v5066_v43 = vcombine.low %v2709_v32, %v2713_v27  ;;  %v5075_v45 = vcombine.high %v2717_v59, %v2721_v40  ;;  %v2764_v31 = vld [vmem:[%s7768_s7 + $0x410] sm:$0xff]  ;;  %v2765_v27 = vld [vmem:[%s7768_s7 + $0x418] sm:$0xff] }
 0x3e2   :  { %4464 = vmatprep.subr.bf16.mxu1 %v5019_v44  ;;  %v5073_v44 = vcombine.high %v2716_v37, %v2720_v38  ;;  %v2768_v32 = vld [vmem:[%s7768_s7 + $0x430] sm:$0xff] }
 0x3e4   :  { %4383 = vmatpush1.bf16.msra.mxu0 %v5016_v50  ;;  %v2729_v50 = vld [vmem:[%s7768_s7 + $0x2f8] sm:$0xff] }
 0x3e5   :  { %4465 = vmatpush1.bf16.msra.mxu1 %v5018_v51  ;;  %4384 = vmatprep.subr.bf16.mxu0 %v5025_v53  ;;  %v5072_v51 = vcombine.low %v2716_v37, %v2720_v38  ;;  %v5074_v53 = vcombine.low %v2717_v59, %v2721_v40  ;;  %v5083_v55 = vcombine.high %v2725_v48, %v2729_v50  ;;  %v2772_v38 = vld [vmem:[%s7768_s7 + $0x450] sm:$0xff] }
 0x3e6   :  { %4466 = vmatprep.subr.bf16.mxu1 %v5027_v54  ;;  %v5081_v54 = vcombine.high %v2724_v46, %v2728_v47  ;;  %v2776_v59 = vld [vmem:[%s7768_s7 + $0x470] sm:$0xff]  ;;  %v5120_v40 = vcombine.low %v2764_v31, %v2768_v32 }
 0x3e8   :  { %4385 = vmatpush1.bf16.msra.mxu0 %v5024_v61  ;;  %v2737_v61 = vld [vmem:[%s7768_s7 + $0x338] sm:$0xff] }
 0x3e9   :  { %4467 = vmatpush1.bf16.msra.mxu1 %v5026_v62  ;;  %4386 = vmatprep.subr.bf16.mxu0 %v5033_v1  ;;  %v5080_v62 = vcombine.low %v2724_v46, %v2728_v47  ;;  %v5082_v1 = vcombine.low %v2725_v48, %v2729_v50  ;;  %v5091_v34 = vcombine.high %v2733_v58, %v2737_v61  ;;  %v2780_v46 = vld [vmem:[%s7768_s7 + $0x490] sm:$0xff]  ;;  %v2781_v50 = vld [vmem:[%s7768_s7 + $0x498] sm:$0xff] }
 0x3ea   :  { %4468 = vmatprep.subr.bf16.mxu1 %v5035_v4  ;;  %v5089_v4 = vcombine.high %v2732_v56, %v2736_v57  ;;  %v2784_v47 = vld [vmem:[%s7768_s7 + $0x4b0] sm:$0xff] }
 0x3ec   :  { %4387 = vmatpush1.bf16.msra.mxu0 %v5032_v9  ;;  %v2745_v9 = vld [vmem:[%s7768_s7 + $0x378] sm:$0xff] }
 0x3ed   :  { %4469 = vmatpush1.bf16.msra.mxu1 %v5034_v10  ;;  %4388 = vmatprep.subr.bf16.mxu0 %v5041_v11  ;;  %v5088_v10 = vcombine.low %v2732_v56, %v2736_v57  ;;  %v5090_v11 = vcombine.low %v2733_v58, %v2737_v61  ;;  %v5099_v52 = vcombine.high %v2741_v8, %v2745_v9  ;;  %v2788_v57 = vld [vmem:[%s7768_s7 + $0x4d0] sm:$0xff]  ;;  %v2793_v61 = vld [vmem:[%s7768_s7 + $0x4f8] sm:$0xff] }
 0x3ee   :  { %4470 = vmatprep.subr.bf16.mxu1 %v5043_v12  ;;  %v5097_v12 = vcombine.high %v2740_v5, %v2744_v6  ;;  %v2792_v58 = vld [vmem:[%s7768_s7 + $0x4f0] sm:$0xff] }
 0x3f0   :  { %4389 = vmatpush1.bf16.msra.mxu0 %v5040_v17  ;;  %v2753_v17 = vld [vmem:[%s7768_s7 + $0x3b8] sm:$0xff] }
 0x3f1   :  { %4471 = vmatpush1.bf16.msra.mxu1 %v5042_v18  ;;  %4390 = vmatprep.subr.bf16.mxu0 %v5049_v19  ;;  %v5096_v18 = vcombine.low %v2740_v5, %v2744_v6  ;;  %v5098_v19 = vcombine.low %v2741_v8, %v2745_v9  ;;  %v5107_v21 = vcombine.high %v2749_v16, %v2753_v17  ;;  %v2800_v5 = vld [vmem:[%s7768_s7 + $0x530] sm:$0xff]  ;;  %v2797_v6 = vld [vmem:[%s7768_s7 + $0x518] sm:$0xff] }
 0x3f2   :  { %4472 = vmatprep.subr.bf16.mxu1 %v5051_v20  ;;  %v5105_v20 = vcombine.high %v2748_v39, %v2752_v15  ;;  %v2801_v8 = vld [vmem:[%s7768_s7 + $0x538] sm:$0xff]  ;;  %v5144_v9 = vcombine.low %v2788_v57, %v2792_v58 }
 0x3f4   :  { %4391 = vmatpush1.bf16.msra.mxu0 %v5048_v26  ;;  %v2761_v26 = vld [vmem:[%s7768_s7 + $0x3f8] sm:$0xff] }
 0x3f5   :  { %4473 = vmatpush1.bf16.msra.mxu1 %v5050_v28  ;;  %4392 = vmatprep.subr.bf16.mxu0 %v5057_v29  ;;  %v5104_v28 = vcombine.low %v2748_v39, %v2752_v15  ;;  %v5106_v29 = vcombine.low %v2749_v16, %v2753_v17  ;;  %v5115_v14 = vcombine.high %v2757_v24, %v2761_v26  ;;  %v2808_v39 = vld [vmem:[%s7768_s7 + $0x570] sm:$0xff]  ;;  %v2805_v15 = vld [vmem:[%s7768_s7 + $0x558] sm:$0xff] }
 0x3f6   :  { %4474 = vmatprep.subr.bf16.mxu1 %v5059_v30  ;;  %v5113_v30 = vcombine.high %v2756_v22, %v2760_v23  ;;  %v2809_v16 = vld [vmem:[%s7768_s7 + $0x578] sm:$0xff] }
 0x3f8   :  { %4393 = vmatpush1.bf16.msra.mxu0 %v5056_v33  ;;  %v2769_v33 = vld [vmem:[%s7768_s7 + $0x438] sm:$0xff] }
 0x3f9   :  { %4475 = vmatpush1.bf16.msra.mxu1 %v5058_v25  ;;  %4394 = vmatprep.subr.bf16.mxu0 %v5065_v35  ;;  %v5112_v25 = vcombine.low %v2756_v22, %v2760_v23  ;;  %v5114_v35 = vcombine.low %v2757_v24, %v2761_v26  ;;  %v5123_v37 = vcombine.high %v2765_v27, %v2769_v33  ;;  %v2816_v22 = vld [vmem:[%s7768_s7 + $0x5b0] sm:$0xff]  ;;  %v2813_v23 = vld [vmem:[%s7768_s7 + $0x598] sm:$0xff] }
 0x3fa   :  { %4476 = vmatprep.subr.bf16.mxu1 %v5067_v36  ;;  %v5121_v36 = vcombine.high %v2764_v31, %v2768_v32  ;;  %v2817_v24 = vld [vmem:[%s7768_s7 + $0x5b8] sm:$0xff]  ;;  %v2824_v31 = vld [vmem:[%s7768_s7 + $0x5f0] sm:$0xff] }
 0x3fb   :  { %v2821_v32 = vld [vmem:[%s7768_s7 + $0x5d8] sm:$0xff] }
 0x3fc   :  { %4395 = vmatpush1.bf16.msra.mxu0 %v5064_v41  ;;  %v2773_v41 = vld [vmem:[%s7768_s7 + $0x458] sm:$0xff] }
 0x3fd   :  { %4477 = vmatpush1.bf16.msra.mxu1 %v5066_v43  ;;  %4396 = vmatprep.subr.bf16.mxu0 %v5073_v44  ;;  %v2777_v43 = vld [vmem:[%s7768_s7 + $0x478] sm:$0xff]  ;;  %v5122_v44 = vcombine.low %v2765_v27, %v2769_v33 }
 0x3fe   :  { %4478 = vmatprep.subr.bf16.mxu1 %v5075_v45  ;;  %v5129_v45 = vcombine.high %v2772_v38, %v2776_v59  ;;  %v5131_v48 = vcombine.high %v2773_v41, %v2777_v43  ;;  %v2825_v27 = vld [vmem:[%s7768_s7 + $0x5f8] sm:$0xff] }
 0x400   :  { %4397 = vmatpush1.bf16.msra.mxu0 %v5072_v51  ;;  %v2785_v51 = vld [vmem:[%s7768_s7 + $0x4b8] sm:$0xff] }
 0x401   :  { %4479 = vmatpush1.bf16.msra.mxu1 %v5074_v53  ;;  %4398 = vmatprep.subr.bf16.mxu0 %v5081_v54  ;;  %v5128_v53 = vcombine.low %v2772_v38, %v2776_v59  ;;  %v5130_v54 = vcombine.low %v2773_v41, %v2777_v43  ;;  %v5139_v56 = vcombine.high %v2781_v50, %v2785_v51  ;;  %v2832_v38 = vld [vmem:[%s7768_s7 + $0x630] sm:$0xff]  ;;  %v2829_v59 = vld [vmem:[%s7768_s7 + $0x618] sm:$0xff] }
 0x402   :  { %4480 = vmatprep.subr.bf16.mxu1 %v5083_v55  ;;  %v5137_v55 = vcombine.high %v2780_v46, %v2784_v47  ;;  %v5178_v43 = vcombine.low %v2821_v32, %v2825_v27 }
 0x404   :  { %4399 = vmatpush1.bf16.msra.mxu0 %v5080_v62  ;;  %v5138_v62 = vcombine.low %v2781_v50, %v2785_v51  ;;  %v2841_v50 = vld [vmem:[%s7768_s7 + $0x678] sm:$0xff] }
 0x405   :  { %4481 = vmatpush1.bf16.msra.mxu1 %v5082_v1  ;;  %4400 = vmatprep.subr.bf16.mxu0 %v5089_v4  ;;  %v5145_v1 = vcombine.high %v2788_v57, %v2792_v58  ;;  %v2848_v57 = vld [vmem:[%s7768_s7 + $0x6b0] sm:$0xff]  ;;  %v2845_v58 = vld [vmem:[%s7768_s7 + $0x698] sm:$0xff] }
 0x406   :  { %4482 = vmatprep.subr.bf16.mxu1 %v5091_v34  ;;  %v2796_v34 = vld [vmem:[%s7768_s7 + $0x510] sm:$0xff] }
 0x407   :  { %v5152_v17 = vcombine.low %v2796_v34, %v2800_v5 }
 0x408   :  { %4401 = vmatpush1.bf16.msra.mxu0 %v5088_v10 }
 0x409   :  { %4483 = vmatpush1.bf16.msra.mxu1 %v5090_v11  ;;  %4402 = vmatprep.subr.bf16.mxu0 %v5097_v12  ;;  %v5153_v11 = vcombine.high %v2796_v34, %v2800_v5  ;;  %v5155_v12 = vcombine.high %v2797_v6, %v2801_v8  ;;  %v2856_v34 = vld [vmem:[%s7768_s7 + $0x6f0] sm:$0xff]  ;;  %v2853_v5 = vld [vmem:[%s7768_s7 + $0x6d8] sm:$0xff] }
 0x40a   :  { %4484 = vmatprep.subr.bf16.mxu1 %v5099_v52  ;;  %v2804_v52 = vld [vmem:[%s7768_s7 + $0x550] sm:$0xff] }
 0x40b   :  { %v5160_v26 = vcombine.low %v2804_v52, %v2808_v39 }
 0x40c   :  { %4403 = vmatpush1.bf16.msra.mxu0 %v5096_v18  ;;  %v5154_v18 = vcombine.low %v2797_v6, %v2801_v8  ;;  %v2857_v6 = vld [vmem:[%s7768_s7 + $0x6f8] sm:$0xff] }
 0x40d   :  { %4485 = vmatpush1.bf16.msra.mxu1 %v5098_v19  ;;  %4404 = vmatprep.subr.bf16.mxu0 %v5105_v20  ;;  %v5161_v19 = vcombine.high %v2804_v52, %v2808_v39  ;;  %v5163_v20 = vcombine.high %v2805_v15, %v2809_v16  ;;  %v2864_v52 = vld [vmem:[%s7768_s7 + $0x730] sm:$0xff]  ;;  %v2861_v39 = vld [vmem:[%s7768_s7 + $0x718] sm:$0xff] }
 0x40e   :  { %4486 = vmatprep.subr.bf16.mxu1 %v5107_v21  ;;  %v2812_v21 = vld [vmem:[%s7768_s7 + $0x590] sm:$0xff] }
 0x40f   :  { %v5168_v33 = vcombine.low %v2812_v21, %v2816_v22 }
 0x410   :  { %4405 = vmatpush1.bf16.msra.mxu0 %v5104_v28  ;;  %v5162_v28 = vcombine.low %v2805_v15, %v2809_v16  ;;  %v2865_v15 = vld [vmem:[%s7768_s7 + $0x738] sm:$0xff] }
 0x411   :  { %4487 = vmatpush1.bf16.msra.mxu1 %v5106_v29  ;;  %4406 = vmatprep.subr.bf16.mxu0 %v5113_v30  ;;  %v5169_v29 = vcombine.high %v2812_v21, %v2816_v22  ;;  %v5171_v30 = vcombine.high %v2813_v23, %v2817_v24  ;;  %v2872_v21 = vld [vmem:[%s7768_s7 + $0x770] sm:$0xff]  ;;  %v2869_v22 = vld [vmem:[%s7768_s7 + $0x758] sm:$0xff] }
 0x412   :  { %4488 = vmatprep.subr.bf16.mxu1 %v5115_v14  ;;  %v2820_v14 = vld [vmem:[%s7768_s7 + $0x5d0] sm:$0xff] }
 0x413   :  { %v5176_v41 = vcombine.low %v2820_v14, %v2824_v31 }
 0x414   :  { %4407 = vmatpush1.bf16.msra.mxu0 %v5112_v25  ;;  %v5170_v25 = vcombine.low %v2813_v23, %v2817_v24  ;;  %v2873_v23 = vld [vmem:[%s7768_s7 + $0x778] sm:$0xff] }
 0x415   :  { %4489 = vmatpush1.bf16.msra.mxu1 %v5114_v35  ;;  %4417 = vmatprep.subr.bf16.mxu0 %v5121_v36  ;;  %v5177_v35 = vcombine.high %v2820_v14, %v2824_v31  ;;  %v5179_v36 = vcombine.high %v2821_v32, %v2825_v27  ;;  %v2880_v14 = vld [vmem:[%s7768_s7 + $0x7b0] sm:$0xff]  ;;  %v2877_v31 = vld [vmem:[%s7768_s7 + $0x798] sm:$0xff] }
 0x416   :  { %4499 = vmatprep.subr.bf16.mxu1 %v5123_v37  ;;  %v2828_v37 = vld [vmem:[%s7768_s7 + $0x610] sm:$0xff]  ;;  %v2881_v32 = vld [vmem:[%s7768_s7 + $0x7b8] sm:$0xff] }
 0x417   :  { %4409 = vmatmul.mubr.bf16.vlgmr.msra.gmra.mrb[16].mxu0 %v7150_v60  ;;  %v5184_v51 = vcombine.low %v2828_v37, %v2832_v38 }
 0x418   :  { %4491 = vmatmul.mubr.bf16.vlgmr.msra.gmra.mrb[16].mxu1 %v7150_v60  ;;  %4418 = vmatpush1.bf16.msra.mxu0 %v5120_v40  ;;  %v2789_v60 = vld [vmem:[%s7768_s7 + $0x4d8] sm:$0xff] }
 0x419   :  { %4449 = vmatprep.mubr.bf16.mxu0 %v7166_v7  ;;  %4500 = vmatpush1.bf16.msra.mxu1 %v5122_v44  ;;  %v5147_v4 = vcombine.high %v2789_v60, %v2793_v61  ;;  %v5146_v10 = vcombine.low %v2789_v60, %v2793_v61  ;;  %v2833_v40 = vld [vmem:[%s7768_s7 + $0x638] sm:$0xff]  ;;  %v5185_v44 = vcombine.high %v2828_v37, %v2832_v38  ;;  %v2888_v37 = vld [vmem:[%s7768_s7 + $0x7f0] sm:$0xff] }
 0x41a   :  { %4531 = vmatprep.mubr.bf16.mxu1 %v7166_v7  ;;  %4419 = vmatprep.subr.bf16.mxu0 %v5129_v45  ;;  %v5136_v7 = vcombine.low %v2780_v46, %v2784_v47  ;;  %v5187_v45 = vcombine.high %v2829_v59, %v2833_v40  ;;  %v2836_v46 = vld [vmem:[%s7768_s7 + $0x650] sm:$0xff]  ;;  %v2849_v60 = vld [vmem:[%s7768_s7 + $0x6b8] sm:$0xff] }
 0x41b   :  { %4501 = vmatprep.subr.bf16.mxu1 %v5131_v48  ;;  %v2840_v47 = vld [vmem:[%s7768_s7 + $0x670] sm:$0xff]  ;;  %v2837_v48 = vld [vmem:[%s7768_s7 + $0x658] sm:$0xff] }
 0x41c   :  { %4420 = vmatpush1.bf16.msra.mxu0 %v5128_v53  ;;  %v5186_v53 = vcombine.low %v2829_v59, %v2833_v40  ;;  %v5192_v61 = vcombine.low %v2836_v46, %v2840_v47  ;;  %v2885_v38 = vld [vmem:[%s7768_s7 + $0x7d8] sm:$0xff] }
 0x41d   :  { %4502 = vmatpush1.bf16.msra.mxu1 %v5130_v54  ;;  %4421 = vmatprep.subr.bf16.mxu0 %v5137_v55  ;;  %v5193_v54 = vcombine.high %v2836_v46, %v2840_v47  ;;  %v5195_v55 = vcombine.high %v2837_v48, %v2841_v50  ;;  %v2889_v59 = vld [vmem:[%s7768_s7 + $0x7f8] sm:$0xff]  ;;  %v7730_v47 = vld [vmem:[%s7771_s8] sm:$0xff] }
 0x41e   :  { %4503 = vmatprep.subr.bf16.mxu1 %v5139_v56  ;;  %v2844_v56 = vld [vmem:[%s7768_s7 + $0x690] sm:$0xff]  ;;  %v5242_v46 = vcombine.low %v2885_v38, %v2889_v59 }
 0x41f   :  { %v5200_v8 = vcombine.low %v2844_v56, %v2848_v57 }
 0x420   :  { %4422 = vmatpush1.bf16.msra.mxu0 %v5136_v7  ;;  %v5194_v7 = vcombine.low %v2837_v48, %v2841_v50  ;;  %v2895_v48 = vrot.slane %v7730_v47, %v6808_v63  ;;  %v2903_v50 = vrot.slane %v7730_v47, %v6811_v0 }
 0x421   :  { %4504 = vmatpush1.bf16.msra.mxu1 %v5138_v62  ;;  %4423 = vmatprep.subr.bf16.mxu0 %v5145_v1  ;;  %v5201_v62 = vcombine.high %v2844_v56, %v2848_v57  ;;  %v5203_v1 = vcombine.high %v2845_v58, %v2849_v60 }
 0x422   :  { %4505 = vmatprep.subr.bf16.mxu1 %v5147_v4  ;;  %v2852_v4 = vld [vmem:[%s7768_s7 + $0x6d0] sm:$0xff] }
 0x423   :  { %v5208_v16 = vcombine.low %v2852_v4, %v2856_v34 }
 0x424   :  { %4424 = vmatpush1.bf16.msra.mxu0 %v5144_v9  ;;  %v5202_v9 = vcombine.low %v2845_v58, %v2849_v60 }
 0x425   :  { %4506 = vmatpush1.bf16.msra.mxu1 %v5146_v10  ;;  %4425 = vmatprep.subr.bf16.mxu0 %v5153_v11  ;;  %v5209_v10 = vcombine.high %v2852_v4, %v2856_v34  ;;  %v5211_v11 = vcombine.high %v2853_v5, %v2857_v6 }
 0x426   :  { %4507 = vmatprep.subr.bf16.mxu1 %v5155_v12  ;;  %v2860_v12 = vld [vmem:[%s7768_s7 + $0x710] sm:$0xff] }
 0x427   :  { %v5216_v24 = vcombine.low %v2860_v12, %v2864_v52 }
 0x428   :  { %4426 = vmatpush1.bf16.msra.mxu0 %v5152_v17  ;;  %v5210_v17 = vcombine.low %v2853_v5, %v2857_v6 }
 0x429   :  { %4508 = vmatpush1.bf16.msra.mxu1 %v5154_v18  ;;  %4427 = vmatprep.subr.bf16.mxu0 %v5161_v19  ;;  %v5217_v18 = vcombine.high %v2860_v12, %v2864_v52  ;;  %v5219_v19 = vcombine.high %v2861_v39, %v2865_v15 }
 0x42a   :  { %4509 = vmatprep.subr.bf16.mxu1 %v5163_v20  ;;  %v2868_v20 = vld [vmem:[%s7768_s7 + $0x750] sm:$0xff] }
 0x42b   :  { %v5224_v27 = vcombine.low %v2868_v20, %v2872_v21 }
 0x42c   :  { %4428 = vmatpush1.bf16.msra.mxu0 %v5160_v26  ;;  %v5218_v26 = vcombine.low %v2861_v39, %v2865_v15 }
 0x42d   :  { %4510 = vmatpush1.bf16.msra.mxu1 %v5162_v28  ;;  %4429 = vmatprep.subr.bf16.mxu0 %v5169_v29  ;;  %v5225_v28 = vcombine.high %v2868_v20, %v2872_v21  ;;  %v5227_v29 = vcombine.high %v2869_v22, %v2873_v23 }
 0x42e   :  { %4511 = vmatprep.subr.bf16.mxu1 %v5171_v30  ;;  %v2876_v30 = vld [vmem:[%s7768_s7 + $0x790] sm:$0xff] }
 0x42f   :  { %v5232_v40 = vcombine.low %v2876_v30, %v2880_v14 }
 0x430   :  { %4430 = vmatpush1.bf16.msra.mxu0 %v5168_v33  ;;  %v5226_v33 = vcombine.low %v2869_v22, %v2873_v23 }
 0x431   :  { %4512 = vmatpush1.bf16.msra.mxu1 %v5170_v25  ;;  %4431 = vmatprep.subr.bf16.mxu0 %v5177_v35  ;;  %v5233_v25 = vcombine.high %v2876_v30, %v2880_v14  ;;  %v5235_v35 = vcombine.high %v2877_v31, %v2881_v32 }
 0x432   :  { %4513 = vmatprep.subr.bf16.mxu1 %v5179_v36  ;;  %v2884_v36 = vld [vmem:[%s7768_s7 + $0x7d0] sm:$0xff] }
 0x434   :  { %4432 = vmatpush1.bf16.msra.mxu0 %v5176_v41  ;;  %v5234_v41 = vcombine.low %v2877_v31, %v2881_v32 }
 0x435   :  { %4514 = vmatpush1.bf16.msra.mxu1 %v5178_v43  ;;  %4433 = vmatprep.subr.bf16.mxu0 %v5185_v44  ;;  %v5241_v43 = vcombine.high %v2884_v36, %v2888_v37  ;;  %v5243_v44 = vcombine.high %v2885_v38, %v2889_v59 }
 0x436   :  { %4515 = vmatprep.subr.bf16.mxu1 %v5187_v45  ;;  %v5240_v45 = vcombine.low %v2884_v36, %v2888_v37  ;;  %v2914_v36 = vsub.s32 5, %v6012_v42  ;;  %v2922_v37 = vsub.s32 7, %v6012_v42 }
 0x438   :  { %4434 = vmatpush1.bf16.msra.mxu0 %v5184_v51  ;;  %v2899_v51 = vrot.slane %v7730_v47, %v6817_v2 }
 0x439   :  { %4516 = vmatpush1.bf16.msra.mxu1 %v5186_v53  ;;  %4435 = vmatprep.subr.bf16.mxu0 %v5193_v54  ;;  %v2907_v53 = vrot.slane %v7730_v47, %v6820_v3 }
 0x43a   :  { %4517 = vmatprep.subr.bf16.mxu1 %v5195_v55 }
 0x43c   :  { %4436 = vmatpush1.bf16.msra.mxu0 %v5192_v61 }
 0x43d   :  { %4518 = vmatpush1.bf16.msra.mxu1 %v5194_v7  ;;  %4437 = vmatprep.subr.bf16.mxu0 %v5201_v62 }
 0x43e   :  { %4519 = vmatprep.subr.bf16.mxu1 %v5203_v1 }
 0x440   :  { %4438 = vmatpush1.bf16.msra.mxu0 %v5200_v8 }
 0x441   :  { %4520 = vmatpush1.bf16.msra.mxu1 %v5202_v9  ;;  %4439 = vmatprep.subr.bf16.mxu0 %v5209_v10 }
 0x442   :  { %4521 = vmatprep.subr.bf16.mxu1 %v5211_v11 }
 0x444   :  { %4440 = vmatpush1.bf16.msra.mxu0 %v5208_v16 }
 0x445   :  { %4522 = vmatpush1.bf16.msra.mxu1 %v5210_v17  ;;  %4441 = vmatprep.subr.bf16.mxu0 %v5217_v18 }
 0x446   :  { %4523 = vmatprep.subr.bf16.mxu1 %v5219_v19 }
 0x448   :  { %4442 = vmatpush1.bf16.msra.mxu0 %v5216_v24 }
 0x449   :  { %4524 = vmatpush1.bf16.msra.mxu1 %v5218_v26  ;;  %4443 = vmatprep.subr.bf16.mxu0 %v5225_v28 }
 0x44a   :  { %4525 = vmatprep.subr.bf16.mxu1 %v5227_v29 }
 0x44c   :  { %4444 = vmatpush1.bf16.msra.mxu0 %v5224_v27 }
 0x44d   :  { %4526 = vmatpush1.bf16.msra.mxu1 %v5226_v33  ;;  %4445 = vmatprep.subr.bf16.mxu0 %v5233_v25  ;;  %v2910_v25 = vsub.s32 4, %v6012_v42 }
 0x44e   :  { %4527 = vmatprep.subr.bf16.mxu1 %v5235_v35  ;;  %v2918_v35 = vsub.s32 6, %v6012_v42 }
 0x44f   :  { %v2911_v38 = vrot.slane %v7730_v47, %v2910_v25 }
 0x450   :  { %4446 = vmatpush1.bf16.msra.mxu0 %v5232_v40  ;;  %v2919_v59 = vrot.slane %v7730_v47, %v2918_v35  ;;  %v2915_v40 = vrot.slane %v7730_v47, %v2914_v36 }
 0x451   :  { %4528 = vmatpush1.bf16.msra.mxu1 %v5234_v41  ;;  %4447 = vmatprep.subr.bf16.mxu0 %v5241_v43  ;;  %v2923_v41 = vrot.slane %v7730_v47, %v2922_v37 }
 0x452   :  { %4529 = vmatprep.subr.bf16.mxu1 %v5243_v44 }
 0x454   :  { %4448 = vmatpush1.bf16.msra.mxu0 %v5240_v45 }
 0x455   :  { %4530 = vmatpush1.bf16.msra.mxu1 %v5242_v46 }
 0x457   :  { %4450 = vmatmul.mubr.bf16.vlgmr.msra.gmra.mrb[16].mxu0 %v7355_v13 }
 0x458   :  { %4532 = vmatmul.mubr.bf16.vlgmr.msra.gmra.mrb[16].mxu1 %v7355_v13 }
 0x4aa   :  { %v4287_v54 = vpop.f32.mrb[12].mxu0  ;;  %v4369_v55 = vpop.f32.mrb[12].mxu1 }
 0x4ab   :  { %v5296_v13 = vadd.f32 %v4287_v54, %v2895_v48  ;;  %v5298_v56 = vadd.f32 %v4369_v55, %v2903_v50  ;;  %v4289_v57 = vpop.f32.mrb[13].mxu0  ;;  %v4371_v58 = vpop.f32.mrb[13].mxu1 }
 0x4ac   :  { %v5297_v60 = vadd.f32 %v4289_v57, %v2899_v51  ;;  %v5299_v61 = vadd.f32 %v4371_v58, %v2907_v53  ;;  %v4291_v7 = vpop.f32.mrb[14].mxu0  ;;  %v4373_v62 = vpop.f32.mrb[14].mxu1 }
 0x4ad   :  { %v4540_v63 = vsub.f32 0.0, %v5296_v13  ;;  %v4542_v1 = vsub.f32 0.0, %v5298_v56  ;;  %v4292_v4 = vpop.f32.mrb[15].mxu0  ;;  %v4374_v0 = vpop.f32.mrb[15].mxu1 }
 0x4ae   :  { %v4541_v34 = vsub.f32 0.0, %v5297_v60  ;;  %v4543_v5 = vsub.f32 0.0, %v5299_v61 }
 0x4af   :  { %v4548_v2 = vmul.f32 1.442695, %v4540_v63  ;;  %v4552_v6 = vmul.f32 1.442695, %v4542_v1 }
 0x4b0   :  { %v4550_v8 = vmul.f32 1.442695, %v4541_v34  ;;  %v4554_v3 = vmul.f32 1.442695, %v4543_v5 }
 0x4b1   :  { %5811 = vpow2.f32 %v4548_v2 }
 0x4b2   :  { %5813 = vpow2.f32 %v4552_v6 }
 0x4b3   :  { %5815 = vpow2.f32 %v4550_v8 }
 0x4b4   :  { %5817 = vpow2.f32 %v4554_v3 }
 0x4bb   :  { %v5812_v9 = vpop.eup %5811 }
 0x4bc   :  { %v5814_v10 = vpop.eup %5813  ;;  %v4564_v11 = vadd.f32 1.0, %v5812_v9 }
 0x4bd   :  { %v5816_v12 = vpop.eup %5815  ;;  %v4566_v52 = vadd.f32 1.0, %v5814_v10 }
 0x4be   :  { %v5818_v39 = vpop.eup %5817  ;;  %5819 = vrcp.f32 %v4564_v11  ;;  %v4565_v15 = vadd.f32 1.0, %v5816_v12 }
 0x4bf   :  { %5821 = vrcp.f32 %v4566_v52  ;;  %v4567_v16 = vadd.f32 1.0, %v5818_v39 }
 0x4c0   :  { %5823 = vrcp.f32 %v4565_v15 }
 0x4c1   :  { %5825 = vrcp.f32 %v4567_v16 }
 0x4c8   :  { %v5820_v17 = vpop.eup %5819 }
 0x4c9   :  { %v5822_v18 = vpop.eup %5821  ;;  %v4580_v19 = vmax.f32 %v5820_v17, 0.0 }
 0x4ca   :  { %v5824_v20 = vpop.eup %5823  ;;  %v4582_v21 = vmax.f32 %v5822_v18, 0.0 }
 0x4cb   :  { %v5826_v22 = vpop.eup %5825  ;;  %v4588_v23 = vmin.f32 %v4580_v19, 1.0  ;;  %v4581_v24 = vmax.f32 %v5824_v20, 0.0 }
 0x4cc   :  { %v4590_v26 = vmin.f32 %v4582_v21, 1.0  ;;  %v4583_v28 = vmax.f32 %v5826_v22, 0.0 }
 0x4cd   :  { %v4589_v29 = vmin.f32 %v4581_v24, 1.0 }
 0x4ce   :  { %v4591_v30 = vmin.f32 %v4583_v28, 1.0 }
 0x4cf   :  { %v5244_v14 = vpack.c.bf16 %v4589_v29, %v4588_v23 }
 0x4d0   :  { %v5245_v31 = vpack.c.bf16 %v4591_v30, %v4590_v26 }
 0x4d1   :  { %v7741_v32 = vrot.slane %v5244_v14, %v6030_v49 }
 0x4d2   :  { %v7744_v27 = vrot.slane %v5245_v31, %v6030_v49 }
 0x4d4   :  { %v4644_v33 = vcombine.low %v7741_v32, %v7744_v27 }
 0x4d6   :  { %v4652_v24 = vrot.slane %v4644_v33, %v6030_v49 }
 0x52a   :  { %v4451_v43 = vpop.f32.mrb[16].mxu0 }
 0x52b   :  { %v5300_v44 = vadd.f32 %v4451_v43, %v2911_v38  ;;  %v4533_v45 = vpop.f32.mrb[16].mxu1  ;;  %v4453_v46 = vpop.f32.mrb[17].mxu0 }
 0x52c   :  { %v5302_v48 = vadd.f32 %v4533_v45, %v2919_v59  ;;  %v5301_v50 = vadd.f32 %v4453_v46, %v2915_v40  ;;  %v4535_v51 = vpop.f32.mrb[17].mxu1  ;;  %v4455_v53 = vpop.f32.mrb[18].mxu0 }
 0x52d   :  { %v4544_v54 = vsub.f32 0.0, %v5300_v44  ;;  %v5303_v55 = vadd.f32 %v4535_v51, %v2923_v41  ;;  %v4537_v13 = vpop.f32.mrb[18].mxu1  ;;  %v4456_v42 = vpop.f32.mrb[19].mxu0 }
 0x52e   :  { %v4546_v56 = vsub.f32 0.0, %v5302_v48  ;;  %v4545_v57 = vsub.f32 0.0, %v5301_v50  ;;  %v4538_v58 = vpop.f32.mrb[19].mxu1 }
 0x52f   :  { %v4556_v60 = vmul.f32 1.442695, %v4544_v54  ;;  %v4547_v61 = vsub.f32 0.0, %v5303_v55 }
 0x530   :  { %v4560_v7 = vmul.f32 1.442695, %v4546_v56  ;;  %v4558_v62 = vmul.f32 1.442695, %v4545_v57 }
 0x531   :  { %5827 = vpow2.f32 %v4556_v60  ;;  %v4562_v47 = vmul.f32 1.442695, %v4547_v61 }
 0x532   :  { %5829 = vpow2.f32 %v4560_v7 }
 0x533   :  { %5831 = vpow2.f32 %v4558_v62 }
 0x534   :  { %5833 = vpow2.f32 %v4562_v47 }
 0x53b   :  { %v5828_v63 = vpop.eup %5827 }
 0x53c   :  { %v5830_v1 = vpop.eup %5829  ;;  %v4568_v4 = vadd.f32 1.0, %v5828_v63 }
 0x53d   :  { %v5832_v0 = vpop.eup %5831  ;;  %v4570_v34 = vadd.f32 1.0, %v5830_v1 }
 0x53e   :  { %v5834_v5 = vpop.eup %5833  ;;  %5835 = vrcp.f32 %v4568_v4  ;;  %v4569_v2 = vadd.f32 1.0, %v5832_v0 }
 0x53f   :  { %5837 = vrcp.f32 %v4570_v34  ;;  %v4571_v6 = vadd.f32 1.0, %v5834_v5 }
 0x540   :  { %5839 = vrcp.f32 %v4569_v2 }
 0x541   :  { %5841 = vrcp.f32 %v4571_v6 }
 0x548   :  { %v5836_v8 = vpop.eup %5835 }
 0x549   :  { %v5838_v3 = vpop.eup %5837  ;;  %v4584_v9 = vmax.f32 %v5836_v8, 0.0 }
 0x54a   :  { %v5840_v10 = vpop.eup %5839  ;;  %v4586_v11 = vmax.f32 %v5838_v3, 0.0 }
 0x54b   :  { %v5842_v12 = vpop.eup %5841  ;;  %v4592_v52 = vmin.f32 %v4584_v9, 1.0  ;;  %v4585_v39 = vmax.f32 %v5840_v10, 0.0 }
 0x54c   :  { %v4594_v15 = vmin.f32 %v4586_v11, 1.0  ;;  %v4587_v16 = vmax.f32 %v5842_v12, 0.0 }
 0x54d   :  { %v4593_v17 = vmin.f32 %v4585_v39, 1.0 }
 0x54e   :  { %v4595_v18 = vmin.f32 %v4587_v16, 1.0 }
 0x54f   :  { %v5246_v19 = vpack.c.bf16 %v4593_v17, %v4592_v52 }
 0x550   :  { %v5247_v20 = vpack.c.bf16 %v4595_v18, %v4594_v15 }
 0x551   :  { %v4636_v21 = vrot.slane %v5246_v19, %v6030_v49 }
 0x552   :  { %v4643_v22 = vrot.slane %v5247_v20, %v6030_v49 }
 0x554   :  { %v4645_v23 = vcombine.low %v4636_v21, %v4643_v22 }
 0x556   :  { %v4659_v26 = vrot.slane %v4645_v23, %v6030_v49 }
 0x558   :  { %v4660_v28 = vcombine.low %v4652_v24, %v4659_v26 }
 0x55a   :  { %4662 = vst [vmem:[%s7772_s9] sm:$0xff] %v4660_v28 }

</bundles_post_ra>
